<compile_context>
chip_gen: v6e
topology: v6e:2x2x1
jax: 0.10.0
libtpu: 0.0.40
codegen_flags: <defaults>
</compile_context>

<pallas_src>
import jax
import jax.numpy as jnp
import numpy as np
from jax.experimental import pallas as pl
from jax.experimental.pallas import tpu as pltpu

KH = KW = 3       # 3x3 kernel, stride 1, padding 1
P_ALIGN = 128     # lane-aligned offset of the first real pixel in the buffer


def _make_kernel(H, W, Cin, Cout):
    HW = H * W
    L = P_ALIGN + HW + W + 1   # buffer lanes: pre-halo | H*W pixels | post-halo

    def kernel(x1_ref, x2_ref, w_ref, b_ref, o_ref, buf_ref):
        # x1_ref, x2_ref : (1, Cin, H*W)     one image, channel-major, spatial flat
        # w_ref          : (KH*KW, Cout, Cin) per-tap weight matrices
        # b_ref          : (Cout, 1)
        # o_ref          : (1, Cout, H*W)     channel-major output block
        # buf_ref        : VMEM (Cin, L)      row-padded flattened v1

        # ---- zero ONLY the halo (top/bottom pad rows + 1 guard each side); ----
        # ---- the interior is fully overwritten right below.                ----
        halo = jnp.zeros((Cin, W + 1), jnp.float32)
        buf_ref[:, P_ALIGN - W - 1:P_ALIGN] = halo
        buf_ref[:, P_ALIGN + HW:L] = halo

        # ---- fused add, stored 128-lane-aligned into the padded buffer --------
        buf_ref[:, P_ALIGN:P_ALIGN + HW] = x1_ref[0] + x2_ref[0]   # v1 = x1 + x2

        # ---- column-edge masks for the flattened-shift taps --------------------
        col = jax.lax.broadcasted_iota(jnp.int32, (1, HW), 1) % W
        not_left = col != 0          # dx == 0 taps are invalid at w == 0
        not_right = col != (W - 1)   # dx == 2 taps are invalid at w == W-1

        # ---- 9 accumulating K=Cin matmuls straight off shifted buffer slices ---
        acc = jnp.zeros((Cout, HW), jnp.float32)
        for dy in range(KH):
            for dx in range(KW):
                k = dy * KW + dx
                start = P_ALIGN + (dy - 1) * W + (dx - 1)
                tap = buf_ref[:, start:start + HW]            # (Cin, H*W)
                if dx == 0:
                    tap = jnp.where(not_left, tap, 0.0)
                elif dx == 2:
                    tap = jnp.where(not_right, tap, 0.0)
                acc = acc + jnp.dot(w_ref[k], tap,
                                    preferred_element_type=jnp.float32)

        # ---- bias + SiLU (exp on EUP; divide replaced by EUP reciprocal) -------
        v2 = acc + b_ref[...]
        sig = pl.reciprocal(1.0 + jnp.exp(-v2), approx=False)
        o_ref[0] = v2 * sig

    return kernel


def silu_conv2d(x1_nchw, x2_nchw, weight_oihw, bias):
    """x1, x2: (N, Cin, H, W) f32. weight: (Cout, Cin, 3, 3). bias: (Cout,)."""
    N, Cin, H, W = x1_nchw.shape
    Cout = weight_oihw.shape[0]
    HW = H * W
    L = P_ALIGN + HW + W + 1

    # Free reshapes (contiguous): NO activation transposes.
    x1 = x1_nchw.reshape(N, Cin, HW)
    x2 = x2_nchw.reshape(N, Cin, HW)
    # (Cout, Cin, 3, 3) -> (3, 3, Cout, Cin) -> (9, Cout, Cin): one tiny, one-time
    # parameter transpose (72 KB), constant-foldable in a real model.
    w_taps = jnp.transpose(weight_oihw, (2, 3, 0, 1)).reshape(KH * KW, Cout, Cin)
    b2d = bias.reshape(Cout, 1)

    out = pl.pallas_call(
        _make_kernel(H, W, Cin, Cout),
        out_shape=jax.ShapeDtypeStruct((N, Cout, HW), jnp.float32),
        grid_spec=pltpu.PrefetchScalarGridSpec(
            num_scalar_prefetch=0,
            grid=(N,),   # batch axis: megacore-parallel on v7x, pipelined DMA
            in_specs=[
                pl.BlockSpec((1, Cin, HW), lambda n: (n, 0, 0)),
                pl.BlockSpec((1, Cin, HW), lambda n: (n, 0, 0)),
                pl.BlockSpec((KH * KW, Cout, Cin), lambda n: (0, 0, 0)),
                pl.BlockSpec((Cout, 1), lambda n: (0, 0)),
            ],
            out_specs=pl.BlockSpec((1, Cout, HW), lambda n: (n, 0, 0)),
            scratch_shapes=[pltpu.VMEM((Cin, L), jnp.float32)],   # padded v1
        ),
        compiler_params=pltpu.CompilerParams(
            dimension_semantics=("parallel",)),
    )(x1, x2, w_taps, b2d)

    # (N, Cout, H*W) -> (N, Cout, H, W): free contiguous reshape, already NCHW.
    return out.reshape(N, Cout, H, W)


def reference(x1, x2, w, b):
    v1 = x1 + x2
    v2 = jax.lax.conv_general_dilated(
        v1, w, window_strides=(1, 1), padding=((1, 1), (1, 1)),
        dimension_numbers=("NCHW", "OIHW", "NCHW"))
    v2 = v2 + b.reshape(1, -1, 1, 1)
    return v2 * jax.nn.sigmoid(v2)


if __name__ == "__main__":
    key = jax.random.PRNGKey(0)
    k1, k2, kw, kb = jax.random.split(key, 4)

    # Small shapes consistent with the module: Cin=32 (required by conv1),
    # Cout=64, batch=2, spatial 16x16.
    N, Cin, H, W = 2, 32, 16, 16
    Cout = 64

    x1 = jax.random.normal(k1, (N, Cin, H, W), dtype=jnp.float32)
    x2 = jax.random.normal(k2, (N, Cin, H, W), dtype=jnp.float32)

    # Deterministic parameter init (kaiming-uniform-like bound, as in nn.Conv2d).
    fan_in = Cin * KH * KW
    bound = 1.0 / np.sqrt(fan_in)
    weight = jax.random.uniform(kw, (Cout, Cin, KH, KW), jnp.float32,
                                minval=-bound, maxval=bound)
    bias = jax.random.uniform(kb, (Cout,), jnp.float32,
                              minval=-bound, maxval=bound)

    out = jax.block_until_ready(silu_conv2d(x1, x2, weight, bias))
    ref = jax.block_until_ready(reference(x1, x2, weight, bias))
    np.testing.assert_allclose(np.asarray(out), np.asarray(ref),
                               rtol=1e-4, atol=1e-4)

    print("KERNEL_OK")
</pallas_src>

<mosaic_0001>
module attributes {stable_mosaic.version = 11 : i64} {
  func.func @kernel(%arg0: i32, %arg1: memref<1x32x256xf32, #tpu.memory_space<vmem>>, %arg2: memref<1x32x256xf32, #tpu.memory_space<vmem>>, %arg3: memref<9x64x32xf32, #tpu.memory_space<vmem>>, %arg4: memref<64x1xf32, #tpu.memory_space<vmem>>, %arg5: memref<1x64x256xf32, #tpu.memory_space<vmem>>, %arg6: memref<32x401xf32, #tpu.memory_space<vmem>>) attributes {dimension_semantics = [#tpu.dimension_semantics<parallel>], iteration_bounds = array<i64: 2>, scalar_prefetch = 0 : i64, scratch_operands = 1 : i64, tpu.core_type = #tpu.core_type<tc>, window_params = [{transform_indices = @transform_0, window_bounds = array<i64: 1, 32, 256>}, {transform_indices = @transform_1, window_bounds = array<i64: 1, 32, 256>}, {pipeline_mode = #tpu.pipeline_mode<synchronous>, transform_indices = @transform_2, window_bounds = array<i64: 9, 64, 32>}, {pipeline_mode = #tpu.pipeline_mode<synchronous>, transform_indices = @transform_3, window_bounds = array<i64: 64, 1>}, {transform_indices = @transform_4, window_bounds = array<i64: 1, 64, 256>}]} {
    %cst = arith.constant 0.000000e+00 : f32
    %0 = vector.broadcast %cst : f32 to vector<32x17xf32>
    %c0 = arith.constant 0 : index
    %c111 = arith.constant 111 : index
    %1 = vector.load %arg6[%c0, %c111] : memref<32x401xf32, #tpu.memory_space<vmem>>, vector<32x17xf32>
    tpu.vector_store %arg6[%c0, %c111], %0 {strides = array<i32>} : memref<32x401xf32, #tpu.memory_space<vmem>>, vector<32x17xf32>,
    %c0_0 = arith.constant 0 : index
    %c384 = arith.constant 384 : index
    %2 = vector.load %arg6[%c0_0, %c384] : memref<32x401xf32, #tpu.memory_space<vmem>>, vector<32x17xf32>
    tpu.vector_store %arg6[%c0_0, %c384], %0 {strides = array<i32>} : memref<32x401xf32, #tpu.memory_space<vmem>>, vector<32x17xf32>,
    %c0_1 = arith.constant 0 : index
    %c0_2 = arith.constant 0 : index
    %c0_3 = arith.constant 0 : index
    %3 = vector.load %arg1[%c0_1, %c0_2, %c0_3] : memref<1x32x256xf32, #tpu.memory_space<vmem>>, vector<1x32x256xf32>
    %4 = vector.shape_cast %3 : vector<1x32x256xf32> to vector<32x256xf32>
    %c0_4 = arith.constant 0 : index
    %c0_5 = arith.constant 0 : index
    %c0_6 = arith.constant 0 : index
    %5 = vector.load %arg2[%c0_4, %c0_5, %c0_6] : memref<1x32x256xf32, #tpu.memory_space<vmem>>, vector<1x32x256xf32>
    %6 = vector.shape_cast %5 : vector<1x32x256xf32> to vector<32x256xf32>
    %7 = arith.addf %4, %6 : vector<32x256xf32>
    %c0_7 = arith.constant 0 : index
    %c128 = arith.constant 128 : index
    %8 = vector.load %arg6[%c0_7, %c128] : memref<32x401xf32, #tpu.memory_space<vmem>>, vector<32x256xf32>
    tpu.vector_store %arg6[%c0_7, %c128], %7 {strides = array<i32>} : memref<32x401xf32, #tpu.memory_space<vmem>>, vector<32x256xf32>,
    %9 = tpu.iota {dimensions = array<i32: 1>} : vector<1x256xi32>
    %c16_i32 = arith.constant 16 : i32
    %c0_i32 = arith.constant 0 : i32
    %10 = arith.cmpi eq, %c16_i32, %c0_i32 : i32
    %c1_i32 = arith.constant 1 : i32
    %11 = arith.select %10, %c1_i32, %c16_i32 : i32
    %12 = vector.broadcast %11 : i32 to vector<1x256xi32>
    %13 = arith.remsi %9, %12 : vector<1x256xi32>
    %c0_i32_8 = arith.constant 0 : i32
    %14 = vector.broadcast %c0_i32_8 : i32 to vector<1x256xi32>
    %15 = arith.cmpi ne, %13, %14 : vector<1x256xi32>
    %c0_i32_9 = arith.constant 0 : i32
    %16 = vector.broadcast %c0_i32_9 : i32 to vector<1x256xi32>
    %17 = arith.cmpi slt, %13, %16 : vector<1x256xi32>
    %c0_i32_10 = arith.constant 0 : i32
    %18 = arith.cmpi slt, %11, %c0_i32_10 : i32
    %19 = vector.broadcast %18 : i1 to vector<1x256xi1>
    %20 = vector.broadcast %19 : vector<1x256xi1> to vector<1x256xi1>
    %21 = arith.xori %17, %20 : vector<1x256xi1>
    %22 = arith.andi %21, %15 : vector<1x256xi1>
    %23 = vector.broadcast %11 : i32 to vector<1x256xi32>
    %24 = arith.addi %13, %23 : vector<1x256xi32>
    %25 = arith.select %22, %24, %13 : vector<1x256xi1>, vector<1x256xi32>
    %c0_i32_11 = arith.constant 0 : i32
    %26 = vector.broadcast %c0_i32_11 : i32 to vector<1x256xi32>
    %27 = arith.cmpi ne, %25, %26 : vector<1x256xi32>
    %c15_i32 = arith.constant 15 : i32
    %28 = vector.broadcast %c15_i32 : i32 to vector<1x256xi32>
    %29 = arith.cmpi ne, %25, %28 : vector<1x256xi32>
    %cst_12 = arith.constant 0.000000e+00 : f32
    %30 = vector.broadcast %cst_12 : f32 to vector<64x256xf32>
    %c0_13 = arith.constant 0 : index
    %c111_14 = arith.constant 111 : index
    %31 = vector.load %arg6[%c0_13, %c111_14] : memref<32x401xf32, #tpu.memory_space<vmem>>, vector<32x256xf32>
    %cst_15 = arith.constant 0.000000e+00 : f32
    %32 = vector.shape_cast %27 : vector<1x256xi1> to vector<1x256xi1>
    %33 = vector.broadcast %32 : vector<1x256xi1> to vector<32x256xi1>
    %34 = vector.broadcast %cst_15 : f32 to vector<32x256xf32>
    %35 = arith.select %33, %31, %34 : vector<32x256xi1>, vector<32x256xf32>
    %c0_16 = arith.constant 0 : index
    %c0_17 = arith.constant 0 : index
    %c0_18 = arith.constant 0 : index
    %36 = vector.load %arg3[%c0_16, %c0_17, %c0_18] : memref<9x64x32xf32, #tpu.memory_space<vmem>>, vector<1x64x32xf32>
    %37 = vector.shape_cast %36 : vector<1x64x32xf32> to vector<64x32xf32>
    %cst_19 = arith.constant dense<0.000000e+00> : vector<64x256xf32>
    %38 = tpu.matmul %37, %35, %cst_19 {dimension_numbers = #tpu.dot_dimension_numbers<[1], [0], [0], [1], [0, 0, 1, 1], [], []>} : vector<64x32xf32>, vector<32x256xf32>, vector<64x256xf32> -> vector<64x256xf32>
    %39 = arith.addf %30, %38 : vector<64x256xf32>
    %c0_20 = arith.constant 0 : index
    %c112 = arith.constant 112 : index
    %40 = vector.load %arg6[%c0_20, %c112] : memref<32x401xf32, #tpu.memory_space<vmem>>, vector<32x256xf32>
    %c1 = arith.constant 1 : index
    %c0_21 = arith.constant 0 : index
    %c0_22 = arith.constant 0 : index
    %41 = vector.load %arg3[%c1, %c0_21, %c0_22] : memref<9x64x32xf32, #tpu.memory_space<vmem>>, vector<1x64x32xf32>
    %42 = vector.shape_cast %41 : vector<1x64x32xf32> to vector<64x32xf32>
    %cst_23 = arith.constant dense<0.000000e+00> : vector<64x256xf32>
    %43 = tpu.matmul %42, %40, %cst_23 {dimension_numbers = #tpu.dot_dimension_numbers<[1], [0], [0], [1], [0, 0, 1, 1], [], []>} : vector<64x32xf32>, vector<32x256xf32>, vector<64x256xf32> -> vector<64x256xf32>
    %44 = arith.addf %39, %43 : vector<64x256xf32>
    %c0_24 = arith.constant 0 : index
    %c113 = arith.constant 113 : index
    %45 = vector.load %arg6[%c0_24, %c113] : memref<32x401xf32, #tpu.memory_space<vmem>>, vector<32x256xf32>
    %cst_25 = arith.constant 0.000000e+00 : f32
    %46 = vector.shape_cast %29 : vector<1x256xi1> to vector<1x256xi1>
    %47 = vector.broadcast %46 : vector<1x256xi1> to vector<32x256xi1>
    %48 = vector.broadcast %cst_25 : f32 to vector<32x256xf32>
    %49 = arith.select %47, %45, %48 : vector<32x256xi1>, vector<32x256xf32>
    %c2 = arith.constant 2 : index
    %c0_26 = arith.constant 0 : index
    %c0_27 = arith.constant 0 : index
    %50 = vector.load %arg3[%c2, %c0_26, %c0_27] : memref<9x64x32xf32, #tpu.memory_space<vmem>>, vector<1x64x32xf32>
    %51 = vector.shape_cast %50 : vector<1x64x32xf32> to vector<64x32xf32>
    %cst_28 = arith.constant dense<0.000000e+00> : vector<64x256xf32>
    %52 = tpu.matmul %51, %49, %cst_28 {dimension_numbers = #tpu.dot_dimension_numbers<[1], [0], [0], [1], [0, 0, 1, 1], [], []>} : vector<64x32xf32>, vector<32x256xf32>, vector<64x256xf32> -> vector<64x256xf32>
    %53 = arith.addf %44, %52 : vector<64x256xf32>
    %c0_29 = arith.constant 0 : index
    %c127 = arith.constant 127 : index
    %54 = vector.load %arg6[%c0_29, %c127] : memref<32x401xf32, #tpu.memory_space<vmem>>, vector<32x256xf32>
    %cst_30 = arith.constant 0.000000e+00 : f32
    %55 = vector.shape_cast %27 : vector<1x256xi1> to vector<1x256xi1>
    %56 = vector.broadcast %55 : vector<1x256xi1> to vector<32x256xi1>
    %57 = vector.broadcast %cst_30 : f32 to vector<32x256xf32>
    %58 = arith.select %56, %54, %57 : vector<32x256xi1>, vector<32x256xf32>
    %c3 = arith.constant 3 : index
    %c0_31 = arith.constant 0 : index
    %c0_32 = arith.constant 0 : index
    %59 = vector.load %arg3[%c3, %c0_31, %c0_32] : memref<9x64x32xf32, #tpu.memory_space<vmem>>, vector<1x64x32xf32>
    %60 = vector.shape_cast %59 : vector<1x64x32xf32> to vector<64x32xf32>
    %cst_33 = arith.constant dense<0.000000e+00> : vector<64x256xf32>
    %61 = tpu.matmul %60, %58, %cst_33 {dimension_numbers = #tpu.dot_dimension_numbers<[1], [0], [0], [1], [0, 0, 1, 1], [], []>} : vector<64x32xf32>, vector<32x256xf32>, vector<64x256xf32> -> vector<64x256xf32>
    %62 = arith.addf %53, %61 : vector<64x256xf32>
    %c0_34 = arith.constant 0 : index
    %c128_35 = arith.constant 128 : index
    %63 = vector.load %arg6[%c0_34, %c128_35] : memref<32x401xf32, #tpu.memory_space<vmem>>, vector<32x256xf32>
    %c4 = arith.constant 4 : index
    %c0_36 = arith.constant 0 : index
    %c0_37 = arith.constant 0 : index
    %64 = vector.load %arg3[%c4, %c0_36, %c0_37] : memref<9x64x32xf32, #tpu.memory_space<vmem>>, vector<1x64x32xf32>
    %65 = vector.shape_cast %64 : vector<1x64x32xf32> to vector<64x32xf32>
    %cst_38 = arith.constant dense<0.000000e+00> : vector<64x256xf32>
    %66 = tpu.matmul %65, %63, %cst_38 {dimension_numbers = #tpu.dot_dimension_numbers<[1], [0], [0], [1], [0, 0, 1, 1], [], []>} : vector<64x32xf32>, vector<32x256xf32>, vector<64x256xf32> -> vector<64x256xf32>
    %67 = arith.addf %62, %66 : vector<64x256xf32>
    %c0_39 = arith.constant 0 : index
    %c129 = arith.constant 129 : index
    %68 = vector.load %arg6[%c0_39, %c129] : memref<32x401xf32, #tpu.memory_space<vmem>>, vector<32x256xf32>
    %cst_40 = arith.constant 0.000000e+00 : f32
    %69 = vector.shape_cast %29 : vector<1x256xi1> to vector<1x256xi1>
    %70 = vector.broadcast %69 : vector<1x256xi1> to vector<32x256xi1>
    %71 = vector.broadcast %cst_40 : f32 to vector<32x256xf32>
    %72 = arith.select %70, %68, %71 : vector<32x256xi1>, vector<32x256xf32>
    %c5 = arith.constant 5 : index
    %c0_41 = arith.constant 0 : index
    %c0_42 = arith.constant 0 : index
    %73 = vector.load %arg3[%c5, %c0_41, %c0_42] : memref<9x64x32xf32, #tpu.memory_space<vmem>>, vector<1x64x32xf32>
    %74 = vector.shape_cast %73 : vector<1x64x32xf32> to vector<64x32xf32>
    %cst_43 = arith.constant dense<0.000000e+00> : vector<64x256xf32>
    %75 = tpu.matmul %74, %72, %cst_43 {dimension_numbers = #tpu.dot_dimension_numbers<[1], [0], [0], [1], [0, 0, 1, 1], [], []>} : vector<64x32xf32>, vector<32x256xf32>, vector<64x256xf32> -> vector<64x256xf32>
    %76 = arith.addf %67, %75 : vector<64x256xf32>
    %c0_44 = arith.constant 0 : index
    %c143 = arith.constant 143 : index
    %77 = vector.load %arg6[%c0_44, %c143] : memref<32x401xf32, #tpu.memory_space<vmem>>, vector<32x256xf32>
    %cst_45 = arith.constant 0.000000e+00 : f32
    %78 = vector.shape_cast %27 : vector<1x256xi1> to vector<1x256xi1>
    %79 = vector.broadcast %78 : vector<1x256xi1> to vector<32x256xi1>
    %80 = vector.broadcast %cst_45 : f32 to vector<32x256xf32>
    %81 = arith.select %79, %77, %80 : vector<32x256xi1>, vector<32x256xf32>
    %c6 = arith.constant 6 : index
    %c0_46 = arith.constant 0 : index
    %c0_47 = arith.constant 0 : index
    %82 = vector.load %arg3[%c6, %c0_46, %c0_47] : memref<9x64x32xf32, #tpu.memory_space<vmem>>, vector<1x64x32xf32>
    %83 = vector.shape_cast %82 : vector<1x64x32xf32> to vector<64x32xf32>
    %cst_48 = arith.constant dense<0.000000e+00> : vector<64x256xf32>
    %84 = tpu.matmul %83, %81, %cst_48 {dimension_numbers = #tpu.dot_dimension_numbers<[1], [0], [0], [1], [0, 0, 1, 1], [], []>} : vector<64x32xf32>, vector<32x256xf32>, vector<64x256xf32> -> vector<64x256xf32>
    %85 = arith.addf %76, %84 : vector<64x256xf32>
    %c0_49 = arith.constant 0 : index
    %c144 = arith.constant 144 : index
    %86 = vector.load %arg6[%c0_49, %c144] : memref<32x401xf32, #tpu.memory_space<vmem>>, vector<32x256xf32>
    %c7 = arith.constant 7 : index
    %c0_50 = arith.constant 0 : index
    %c0_51 = arith.constant 0 : index
    %87 = vector.load %arg3[%c7, %c0_50, %c0_51] : memref<9x64x32xf32, #tpu.memory_space<vmem>>, vector<1x64x32xf32>
    %88 = vector.shape_cast %87 : vector<1x64x32xf32> to vector<64x32xf32>
    %cst_52 = arith.constant dense<0.000000e+00> : vector<64x256xf32>
    %89 = tpu.matmul %88, %86, %cst_52 {dimension_numbers = #tpu.dot_dimension_numbers<[1], [0], [0], [1], [0, 0, 1, 1], [], []>} : vector<64x32xf32>, vector<32x256xf32>, vector<64x256xf32> -> vector<64x256xf32>
    %90 = arith.addf %85, %89 : vector<64x256xf32>
    %c0_53 = arith.constant 0 : index
    %c145 = arith.constant 145 : index
    %91 = vector.load %arg6[%c0_53, %c145] : memref<32x401xf32, #tpu.memory_space<vmem>>, vector<32x256xf32>
    %cst_54 = arith.constant 0.000000e+00 : f32
    %92 = vector.shape_cast %29 : vector<1x256xi1> to vector<1x256xi1>
    %93 = vector.broadcast %92 : vector<1x256xi1> to vector<32x256xi1>
    %94 = vector.broadcast %cst_54 : f32 to vector<32x256xf32>
    %95 = arith.select %93, %91, %94 : vector<32x256xi1>, vector<32x256xf32>
    %c8 = arith.constant 8 : index
    %c0_55 = arith.constant 0 : index
    %c0_56 = arith.constant 0 : index
    %96 = vector.load %arg3[%c8, %c0_55, %c0_56] : memref<9x64x32xf32, #tpu.memory_space<vmem>>, vector<1x64x32xf32>
    %97 = vector.shape_cast %96 : vector<1x64x32xf32> to vector<64x32xf32>
    %cst_57 = arith.constant dense<0.000000e+00> : vector<64x256xf32>
    %98 = tpu.matmul %97, %95, %cst_57 {dimension_numbers = #tpu.dot_dimension_numbers<[1], [0], [0], [1], [0, 0, 1, 1], [], []>} : vector<64x32xf32>, vector<32x256xf32>, vector<64x256xf32> -> vector<64x256xf32>
    %99 = arith.addf %90, %98 : vector<64x256xf32>
    %c0_58 = arith.constant 0 : index
    %c0_59 = arith.constant 0 : index
    %100 = vector.load %arg4[%c0_58, %c0_59] : memref<64x1xf32, #tpu.memory_space<vmem>>, vector<64x1xf32>
    %101 = vector.broadcast %100 : vector<64x1xf32> to vector<64x256xf32>
    %102 = arith.addf %99, %101 : vector<64x256xf32>
    %cst_60 = arith.constant 0.000000e+00 : f32
    %103 = vector.broadcast %cst_60 : f32 to vector<64x256xf32>
    %104 = arith.subf %103, %102 : vector<64x256xf32>
    %105 = math.exp %104 : vector<64x256xf32>
    %cst_61 = arith.constant 1.000000e+00 : f32
    %106 = vector.broadcast %cst_61 : f32 to vector<64x256xf32>
    %107 = arith.addf %106, %105 : vector<64x256xf32>
    %108 = tpu.reciprocal %107 : vector<64x256xf32> -> vector<64x256xf32>
    %109 = arith.mulf %102, %108 : vector<64x256xf32>
    %c0_62 = arith.constant 0 : index
    %c0_63 = arith.constant 0 : index
    %c0_64 = arith.constant 0 : index
    %110 = vector.load %arg5[%c0_62, %c0_63, %c0_64] : memref<1x64x256xf32, #tpu.memory_space<vmem>>, vector<1x64x256xf32>
    %111 = vector.shape_cast %110 : vector<1x64x256xf32> to vector<64x256xf32>
    %112 = vector.shape_cast %109 : vector<64x256xf32> to vector<1x64x256xf32>
    tpu.vector_store %arg5[%c0_62, %c0_63, %c0_64], %112 {strides = array<i32>} : memref<1x64x256xf32, #tpu.memory_space<vmem>>, vector<1x64x256xf32>,
    return
  }
  func.func @transform_0(%arg0: i32) -> (i32, i32, i32) {
    %c0_i32 = arith.constant 0 : i32
    %c0_i32_0 = arith.constant 0 : i32
    %c0_i32_1 = arith.constant 0 : i32
    return %arg0, %c0_i32, %c0_i32_0 : i32, i32, i32
  }
  func.func @transform_1(%arg0: i32) -> (i32, i32, i32) {
    %c0_i32 = arith.constant 0 : i32
    %c0_i32_0 = arith.constant 0 : i32
    %c0_i32_1 = arith.constant 0 : i32
    return %arg0, %c0_i32, %c0_i32_0 : i32, i32, i32
  }
  func.func @transform_2(%arg0: i32) -> (i32, i32, i32) {
    %c0_i32 = arith.constant 0 : i32
    %c0_i32_0 = arith.constant 0 : i32
    %c0_i32_1 = arith.constant 0 : i32
    %c0_i32_2 = arith.constant 0 : i32
    return %c0_i32, %c0_i32_0, %c0_i32_1 : i32, i32, i32
  }
  func.func @transform_3(%arg0: i32) -> (i32, i32) {
    %c0_i32 = arith.constant 0 : i32
    %c0_i32_0 = arith.constant 0 : i32
    %c0_i32_1 = arith.constant 0 : i32
    return %c0_i32, %c0_i32_0 : i32, i32
  }
  func.func @transform_4(%arg0: i32) -> (i32, i32, i32) {
    %c0_i32 = arith.constant 0 : i32
    %c0_i32_0 = arith.constant 0 : i32
    %c0_i32_1 = arith.constant 0 : i32
    return %arg0, %c0_i32, %c0_i32_0 : i32, i32, i32
  }
}

</mosaic_0001>

<bundles_post_ra>
// kernel: tpu_custom_call.1
= control target key start
LH: loop header
LB: loop body
LE: loop exit
PB: predicated region body
PF: predicated region fallthrough
CT: control target
= control target key end

     0   :  { %9 = vsyncpa [#allocation4], 0  ;;  %s4021_s0 = inlined_call_operand.vmem [shape: f32[2,32,256], index: 0, kind: input, shape index: {}]   ;;  %s4022_s1 = inlined_call_operand.vmem [shape: f32[2,32,256], index: 1, kind: input, shape index: {}]   ;;  %s4023_s2 = inlined_call_operand.vmem [shape: f32[9,64,32], index: 2, kind: input, shape index: {}]   ;;  %s4024_s3 = inlined_call_operand.vmem [shape: f32[64,1], index: 3, kind: input, shape index: {}]   ;;  %s4025_s4 = inlined_call_operand.hbm [shape: f32[2,64,256], index: 4, kind: output, shape index: {}]  }
   0x1   :  { %11 = vsyncpa [#allocation4 + $0x1], 0  ;;  %s2834_s15 = smov 0   ;;  %s2836_s16 = smov 0  }
   0x2   :  { %s2838_s17 = smov 0   ;;  %s2840_s18 = smov 0  }
   0x3 LB: > { %s2855_s19 = sadd.s32 4294967295, %s2795_s18   ;;  %s2410_s20 = sadd.s32 4294967294, %s2795_s18   ;;  %s2795_s18 = sphi %s2840_s18, %s4085_s18   ;;  %s2791_s17 = sphi %s2838_s17, %s4084_s17   ;;  %s2787_s16 = sphi %s2836_s16, %s4083_s16   ;;  %s2783_s15 = sphi %s2834_s15, %s4082_s15  }
   0x4   : > { %s2859_s21 = sadd.s32 1, %s2795_s18   ;;  %s118_s22 = sadd.s32 1, %s2791_s17 }
   0x5   : > { %s115_s23 = ssub.s32 %s2795_s18, %s2859_s21  ;;  %p128_p0 = scmp.ne.s32.totalorder %s2791_s17, %s2787_s16 }
   0x6   : > { %p116_p1 = scmp.eq.s32.totalorder %s115_s23, 0  ;;  %p129_p2 = scmp.eq.s32.totalorder %s2855_s19, 1 }
   0x7   : > { %p134_p3 = scmp.ne.s32.totalorder %s2787_s16, %s2783_s15  ;;  %p135_p4 = scmp.eq.s32.totalorder %s2410_s20, 1 }
   0x8   : > { %s2870_s24 = scalar_select %p116_p1, %s2791_s17, %s118_s22  }
   0x9   : > { %p2872_p5 = por %p129_p2, %p128_p0  ;;  %p2876_p6 = por %p135_p4, %p134_p3 }
   0xa   : > { %p2413_p7 = scmp.ge.s32.totalorder %s2795_s18, 1  ;;  %p175_p8 = scmp.lt.s32.totalorder %s2795_s18, 3 }
   0xc   : > { %p176_p9 = pnand %p2413_p7, %p175_p8 }
   0xe   : > { %179 = sbr.rel (%p176_p9) target bundleno = 615 (0x267), region = 36 }
  0x13   : > { %vm216_vm0 = vcmask 1048440   ;;  %p206_p10 = scmp.lt.s32.totalorder %s2855_s19, 1  ;;  %vm221_vm1 = vcmask 138240   ;;  %v2797_v0 = vmov 0.0   ;;  %s2798_s9 = smov 16   ;;  %v258_v36 = vlaneseq  ;;  %v2423_v57 = vld [vmem:[%s4023_s2 + $0x60] sm:$0xff] }
  0x14   : > { %220 = vst.msk [vmem:[#allocation2 + $0x60] sm:$0xff] %vm216_vm0, %v2797_v0  ;;  %217 = vst.msk [vmem:[#allocation2] sm:$0xff] %vm216_vm0, %v2797_v0  ;;  %536 = vmatprep.mubr.f32.mxu1 %v2797_v0  ;;  %512 = vmatprep.mubr.f32.mxu0 %v2797_v0  ;;  %s2799_s10 = smov 17   ;;  %s2800_s11 = smov 15   ;;  %vm406_vm2 = vcmask 130048   ;;  %vm423_vm3 = vcmask 261120  }
  0x15   : > { %218 = vst.msk [vmem:[#allocation2 + $0x20] sm:$0xff] %vm216_vm0, %v2797_v0  ;;  %219 = vst.msk [vmem:[#allocation2 + $0x40] sm:$0xff] %vm216_vm0, %v2797_v0  ;;  %s207_s27 = scalar_select %p206_p10, %s2855_s19, 1  ;;  %v3016_v41 = vand.u32 127, %v258_v36  ;;  %v2419_v58 = vld [vmem:[%s4023_s2 + $0x40] sm:$0xff]  ;;  %vm726_vm6 = vcmask 121856  }
  0x16   : > { %225 = vst.msk [vmem:[#allocation2 + $0x78] sm:$0xff] %vm221_vm1, %v2797_v0  ;;  %222 = vst.msk [vmem:[#allocation2 + $0x18] sm:$0xff] %vm221_vm1, %v2797_v0  ;;  %s2801_s12 = smov 1   ;;  %s2802_s13 = smov 127   ;;  %vm937_vm9 = vcmask 7168   ;;  %vm1334_vm10 = vcmask 1039360  }
  0x17   : > { %223 = vst.msk [vmem:[#allocation2 + $0x38] sm:$0xff] %vm221_vm1, %v2797_v0  ;;  %224 = vst.msk [vmem:[#allocation2 + $0x58] sm:$0xff] %vm221_vm1, %v2797_v0  ;;  %s2608_s28 = sshll.u32 %s207_s27, 6  ;;  %s2803_s14 = smov 113   ;;  %v3027_v47 = vadd.s32 128, %v3016_v41  ;;  %v265_v60 = vand.u32 15, %v3016_v41 }
  0x18   : > { %s210_s5 = scalar_lea.vmem %s4021_s0, %s2608_s28  ;;  %s215_s8 = scalar_lea.vmem %s4022_s1, %s2608_s28  ;;  %vm1545_vm11 = vcmask 924672   ;;  %vm1765_vm12 = vcmask 916480   ;;  %vm1959_vm13 = vcmask 908288  }
  0x19   : > { %v232_v1 = vld [vmem:[%s210_s5 + $0x30] sm:$0xff]  ;;  %v230_v3 = vld [vmem:[%s210_s5 + $0x20] sm:$0xff]  ;;  %v233_v6 = vld [vmem:[%s210_s5 + $0x38] sm:$0xff]  ;;  %v272_v52 = vand.u32 15, %v3027_v47  ;;  %vm3068_vm5 = vcmp.ne.s32.totalorder %v265_v60, 0  ;;  %s2804_s6 = smov 112  }
  0x1a   : > { %v240_v2 = vld [vmem:[%s215_s8 + $0x30] sm:$0xff]  ;;  %v238_v5 = vld [vmem:[%s215_s8 + $0x20] sm:$0xff]  ;;  %v241_v7 = vld [vmem:[%s215_s8 + $0x38] sm:$0xff]  ;;  %s2805_s22 = smov 111   ;;  %vm3124_vm8 = vcmp.ne.s32.totalorder %v265_v60, 15  ;;  %s203_s23 = sand.u32 1, %s2787_s16  }
  0x1b   : > { %v2904_v4 = vadd.f32 %v240_v2, %v232_v1  ;;  %v2906_v8 = vld [vmem:[#allocation2 + $0x60] sm:$0xff]  ;;  %v2910_v10 = vadd.f32 %v238_v5, %v230_v3  ;;  %v2912_v11 = vadd.f32 %v241_v7, %v233_v6  ;;  %v229_v13 = vld [vmem:[%s210_s5 + $0x18] sm:$0xff]  ;;  %v231_v16 = vld [vmem:[%s210_s5 + $0x28] sm:$0xff]  ;;  %vm3048_vm4 = vcmp.ne.s32.totalorder %v272_v52, 0  ;;  %s2414_s27 = sshll.u32 %s203_s23, 7  ;;  %s2610_s29 = sshll.u32 %s2855_s19, 11 }
  0x1c   : > { %v2908_v9 = vld [vmem:[#allocation2 + $0x20] sm:$0xff]  ;;  %400 = vrot.lane.b32.xlu1 %v2906_v8, %s2798_s9  ;;  %v237_v14 = vld [vmem:[%s215_s8 + $0x18] sm:$0xff]  ;;  %v239_v17 = vld [vmem:[%s215_s8 + $0x28] sm:$0xff]  ;;  %vm3107_vm7 = vcmp.ne.s32.totalorder %v272_v52, 15  ;;  %s3936_s28 = scalar_lea.vmem [#allocation3], %s2414_s27  ;;  %s3971_s7 = scalar_lea.hbm %s4025_s4, %s2610_s29 }
  0x1d   : > { %v295_v12 = vld [vmem:[#allocation2 + $0x40] sm:$0xff]  ;;  %388 = vrot.lane.b32.xlu0 %v2908_v9, %s2798_s9  ;;  %v2918_v15 = vadd.f32 %v237_v14, %v229_v13  ;;  %v2920_v19 = vadd.f32 %v239_v17, %v231_v16  ;;  %v228_v21 = vld [vmem:[%s210_s5 + $0x10] sm:$0xff]  ;;  %v227_v25 = vld [vmem:[%s210_s5 + $0x8] sm:$0xff]  ;;  %s2336_s30 = sshll.u32 %s3936_s28, 4  ;;  %s3980_s19 = scalar_lea.sflag [#allocation4], %s203_s23  ;;  %s3975_s30 = int_to_ptr.vmem [resolvable:$true] %s2336_s30 }
  0x1e   : > { %v226_v18 = vld [vmem:[%s210_s5] sm:$0xff]  ;;  %v236_v22 = vld [vmem:[%s215_s8 + $0x10] sm:$0xff]  ;;  %v235_v26 = vld [vmem:[%s215_s8 + $0x8] sm:$0xff] }
  0x1f   : > { %v234_v20 = vld [vmem:[%s215_s8] sm:$0xff]  ;;  %v2924_v24 = vadd.f32 %v236_v22, %v228_v21  ;;  %v2929_v27 = vadd.f32 %v235_v26, %v227_v25  ;;  %v2976_v29 = vld [vmem:[#allocation2 + $0x78] sm:$0xff]  ;;  %v2424_v1 = vld [vmem:[%s4023_s2 + $0x68] sm:$0xff]  ;;  %s2735_s8 = scalar_lea.vmem %s3975_s30, 2048 }
  0x20   : > { %v2922_v23 = vadd.f32 %v234_v20, %v226_v18  ;;  %394 = vrot.lane.b32.xlu1 %v295_v12, %s2798_s9  ;;  %v289_v28 = vld [vmem:[#allocation2] sm:$0xff]  ;;  %v2986_v30 = vld [vmem:[#allocation2 + $0x58] sm:$0xff]  ;;  %v2420_v2 = vld [vmem:[%s4023_s2 + $0x48] sm:$0xff]  ;;  %p2736_p11 = scmp.ne.s32.totalorder %s3975_s30, %s2735_s8 }
  0x21   : > { %402 = vrot.lane.b32.xlu0 %v2904_v4, %s2798_s9  ;;  %v3000_v31 = vld [vmem:[#allocation2 + $0x38] sm:$0xff]  ;;  %v367_v60 = vld [vmem:[%s4023_s2 + $0x10] sm:$0xff]  ;;  %v2567_v21 = vld [vmem:[%s4023_s2 + $0x1e0] sm:$0xff] }
  0x22   : > { %v3018_v44 = vld [vmem:[#allocation2 + $0x18] sm:$0xff]  ;;  %v2581_v26 = vld [vmem:[%s4023_s2 + $0x210] sm:$0xff]  ;;  %p2737_p12 = pnand %p2736_p11, %p2872_p5 }
  0x23   : > { %v2426_v16 = vld [vmem:[%s4023_s2 + $0x78] sm:$0xff] }
  0x24   : > { %396 = vrot.lane.b32.xlu1 %v2910_v10, %s2798_s9  ;;  %v2422_v17 = vld [vmem:[%s4023_s2 + $0x58] sm:$0xff]  ;;  %p2738_p13 = pneg %p2737_p12 }
  0x25   : > { %404 = vrot.lane.b32.xlu0 %v2912_v11, %s2798_s9  ;;  %v2149_v3 = vld [vmem:[%s4024_s3 + $0x18] sm:$0xff] }
  0x28   : > { %392 = vrot.lane.b32.xlu1 %v2918_v15, %s2798_s9 }
  0x29   : > { %398 = vrot.lane.b32.xlu0 %v2920_v19, %s2798_s9 }
  0x2c   : > { %384 = vrot.lane.b32.xlu1 %v2922_v23, %s2798_s9 }
  0x2d   : > { %390 = vrot.lane.b32.xlu0 %v2924_v24, %s2798_s9 }
  0x30   : > { %382 = vrot.lane.b32.xlu1 %v289_v28, %s2798_s9 }
  0x31   : > { %386 = vrot.lane.b32.xlu0 %v2929_v27, %s2798_s9 }
  0x34   : > { %339 = vrot.lane.b32.xlu1 %v2912_v11, %s2799_s10 }
  0x35   : > { %337 = vrot.lane.b32.xlu0 %v2904_v4, %s2799_s10 }
  0x38   : > { %331 = vrot.lane.b32.xlu1 %v2910_v10, %s2799_s10 }
  0x39   : > { %335 = vrot.lane.b32.xlu0 %v2906_v8, %s2799_s10 }
  0x3c   : > { %722 = vrot.lane.b32.xlu1 %v2904_v4, %s2800_s11 }
  0x3d   : > { %333 = vrot.lane.b32.xlu0 %v2920_v19, %s2799_s10 }
  0x40   : > { %329 = vrot.lane.b32.xlu1 %v295_v12, %s2799_s10 }
  0x41   : > { %724 = vrot.lane.b32.xlu0 %v2912_v11, %s2800_s11 }
  0x44   : > { %325 = vrot.lane.b32.xlu1 %v2924_v24, %s2799_s10 }
  0x45   : > { %720 = vrot.lane.b32.xlu0 %v2906_v8, %s2800_s11 }
  0x48   : > { %716 = vrot.lane.b32.xlu1 %v2910_v10, %s2800_s11 }
  0x49   : > { %327 = vrot.lane.b32.xlu0 %v2918_v15, %s2799_s10 }
  0x4c   : > { %323 = vrot.lane.b32.xlu1 %v2908_v9, %s2799_s10 }
  0x4d   : > { %718 = vrot.lane.b32.xlu0 %v2920_v19, %s2800_s11 }
  0x50   : > { %319 = vrot.lane.b32.xlu1 %v2922_v23, %s2799_s10 }
  0x51   : > { %714 = vrot.lane.b32.xlu0 %v295_v12, %s2800_s11 }
  0x54   : > { %710 = vrot.lane.b32.xlu1 %v2924_v24, %s2800_s11 }
  0x55   : > { %321 = vrot.lane.b32.xlu0 %v2929_v27, %s2799_s10 }
  0x58   : > { %317 = vrot.lane.b32.xlu1 %v289_v28, %s2799_s10  ;;  %s2807_s10 = smov [#allocation3]  }
  0x59   : > { %712 = vrot.lane.b32.xlu0 %v2918_v15, %s2800_s11 }
  0x5c   : > { %704 = vrot.lane.b32.xlu1 %v2922_v23, %s2800_s11 }
  0x5d   : > { %708 = vrot.lane.b32.xlu0 %v2908_v9, %s2800_s11 }
  0x60   : > { %702 = vrot.lane.b32.xlu1 %v289_v28, %s2800_s11 }
  0x61   : > { %706 = vrot.lane.b32.xlu0 %v2929_v27, %s2800_s11  ;;  %s2739_s11 = sshll.u32 %s2807_s10, 4  ;;  %s2740_s11 = int_to_ptr.vmem [resolvable:$false] %s2739_s11 }
  0x62   : > { %p2742_p0 = scmp.lt.s32.totalorder %s3975_s30, %s2740_s11 }
  0x64   : > { %935 = vrot.lane.b32.xlu1 %v2912_v11, %s2801_s12 }
  0x65   : > { %933 = vrot.lane.b32.xlu0 %v2904_v4, %s2801_s12 }
  0x68   : > { %927 = vrot.lane.b32.xlu1 %v2910_v10, %s2801_s12 }
  0x69   : > { %931 = vrot.lane.b32.xlu0 %v2906_v8, %s2801_s12  ;;  %v2425_v8 = vld [vmem:[%s4023_s2 + $0x70] sm:$0xff] }
  0x6c   : > { %925 = vrot.lane.b32.xlu1 %v295_v12, %s2801_s12 }
  0x6d   : > { %929 = vrot.lane.b32.xlu0 %v2920_v19, %s2801_s12 }
  0x70   : > { %923 = vrot.lane.b32.xlu1 %v2918_v15, %s2801_s12 }
  0x71   : > { %921 = vrot.lane.b32.xlu0 %v2924_v24, %s2801_s12 }
  0x74   : > { %915 = vrot.lane.b32.xlu1 %v2922_v23, %s2801_s12 }
  0x75   : > { %919 = vrot.lane.b32.xlu0 %v2908_v9, %s2801_s12  ;;  %v2421_v9 = vld [vmem:[%s4023_s2 + $0x50] sm:$0xff] }
  0x78   : > { %913 = vrot.lane.b32.xlu1 %v289_v28, %s2801_s12 }
  0x79   : > { %917 = vrot.lane.b32.xlu0 %v2929_v27, %s2801_s12  ;;  %s2741_s12 = scalar_lea.vmem %s2740_s11, 4096 }
  0x7a   : > { %p2743_p1 = scmp.lt.s32.totalorder %s2741_s12, %s2735_s8 }
  0x7c   : > { %1332 = vrot.lane.b32.xlu1 %v2976_v29, %s2802_s13  ;;  %p2744_p2 = por %p2743_p1, %p2742_p0 }
  0x7d   : > { %1330 = vrot.lane.b32.xlu0 %v2912_v11, %s2802_s13 }
  0x7e   : > { %p2745_p3 = pnand %p2744_p2, %p2738_p13 }
  0x80   : > { %1324 = vrot.lane.b32.xlu1 %v2920_v19, %s2802_s13 }
  0x81   : > { %1328 = vrot.lane.b32.xlu0 %v2904_v4, %s2802_s13 }
  0x84   : > { %1541 = vrot.lane.b32.xlu1 %v2912_v11, %s2803_s14 }
  0x85   : > { %1326 = vrot.lane.b32.xlu0 %v2986_v30, %s2802_s13 }
  0x88   : > { %1322 = vrot.lane.b32.xlu1 %v2910_v10, %s2802_s13 }
  0x89   : > { %1543 = vrot.lane.b32.xlu0 %v2976_v29, %s2803_s14 }
  0x8c   : > { %1318 = vrot.lane.b32.xlu1 %v2918_v15, %s2802_s13 }
  0x8d   : > { %1539 = vrot.lane.b32.xlu0 %v2904_v4, %s2803_s14 }
  0x8e   : > { %v401_v32 = vpop.permute.xlu1 %400 }
  0x8f   : > { %v389_v33 = vpop.permute.xlu0 %388 }
  0x90   : > { %1535 = vrot.lane.b32.xlu1 %v2920_v19, %s2803_s14 }
  0x91   : > { %1320 = vrot.lane.b32.xlu0 %v3000_v31, %s2802_s13 }
  0x92   : > { %v395_v34 = vpop.permute.xlu1 %394 }
  0x93   : > { %v403_v35 = vpop.permute.xlu0 %402 }
  0x94   : > { %1316 = vrot.lane.b32.xlu1 %v2924_v24, %s2802_s13  ;;  %v413_v40 = vsel %vm406_vm2, %v401_v32, %v403_v35 }
  0x95   : > { %1537 = vrot.lane.b32.xlu0 %v2986_v30, %s2803_s14 }
  0x96   : > { %v397_v37 = vpop.permute.xlu1 %396 }
  0x97   : > { %v405_v38 = vpop.permute.xlu0 %404  ;;  %v411_v46 = vsel %vm406_vm2, %v395_v34, %v397_v37 }
  0x98   : > { %v414_v39 = vsel %vm406_vm2, %v403_v35, %v405_v38  ;;  %1312 = vrot.lane.b32.xlu1 %v2929_v27, %s2802_s13 }
  0x99   : > { %472 = vmatprep.subr.mxu0 %v414_v39  ;;  %2611 = vmatprep.subr.mxu1 %v414_v39 }
  0x9a   : > { %1533 = vrot.lane.b32.xlu0 %v2910_v10, %s2803_s14  ;;  %v393_v42 = vpop.permute.xlu1 %392  ;;  %473 = vmatpush1.msra.mxu0 %v413_v40 }
  0x9b   : > { %2615 = vmatpush1.msra.mxu1 %v413_v40  ;;  %v399_v43 = vpop.permute.xlu0 %398 }
  0x9c   : > { %v412_v45 = vsel %vm406_vm2, %v397_v37, %v399_v43  ;;  %1529 = vrot.lane.b32.xlu1 %v2918_v15, %s2803_s14 }
  0x9d   : > { %474 = vmatprep.subr.mxu0 %v412_v45  ;;  %2612 = vmatprep.subr.mxu1 %v412_v45 }
  0x9e   : > { %1314 = vrot.lane.b32.xlu0 %v3018_v44, %s2802_s13  ;;  %v385_v48 = vpop.permute.xlu1 %384  ;;  %475 = vmatpush1.msra.mxu0 %v411_v46 }
  0x9f   : > { %2616 = vmatpush1.msra.mxu1 %v411_v46  ;;  %v391_v49 = vpop.permute.xlu0 %390 }
  0xa0   : > { %v410_v50 = vsel %vm406_vm2, %v391_v49, %v393_v42  ;;  %v409_v51 = vsel %vm406_vm2, %v389_v33, %v391_v49  ;;  %1310 = vrot.lane.b32.xlu1 %v2922_v23, %s2802_s13 }
  0xa1   : > { %476 = vmatprep.subr.mxu0 %v410_v50  ;;  %2613 = vmatprep.subr.mxu1 %v410_v50 }
  0xa2   : > { %1531 = vrot.lane.b32.xlu0 %v3000_v31, %s2803_s14  ;;  %v383_v53 = vpop.permute.xlu1 %382  ;;  %477 = vmatpush1.msra.mxu0 %v409_v51 }
  0xa3   : > { %2617 = vmatpush1.msra.mxu1 %v409_v51  ;;  %v387_v54 = vpop.permute.xlu0 %386  ;;  %v407_v56 = vsel %vm406_vm2, %v383_v53, %v385_v48 }
  0xa4   : > { %v408_v55 = vsel %vm406_vm2, %v385_v48, %v387_v54  ;;  %1523 = vrot.lane.b32.xlu1 %v2929_v27, %s2803_s14  ;;  %v366_v54 = vld [vmem:[%s4023_s2 + $0x8] sm:$0xff] }
  0xa5   : > { %478 = vmatprep.subr.mxu0 %v408_v55  ;;  %2614 = vmatprep.subr.mxu1 %v408_v55 }
  0xa6   : > { %1527 = vrot.lane.b32.xlu0 %v2924_v24, %s2803_s14  ;;  %v340_v61 = vpop.permute.xlu1 %339  ;;  %479 = vmatpush1.msra.mxu0 %v407_v56 }
  0xa7   : > { %2618 = vmatpush1.msra.mxu1 %v407_v56  ;;  %v338_v62 = vpop.permute.xlu0 %337  ;;  %2427 = vmatmul.mubr.msk.f32.vlgmr.msra.gmra.mxu0 %vm423_vm3, %v2419_v58 }
  0xa8   : > { %v348_v63 = vsel %vm221_vm1, %v338_v62, %v340_v61  ;;  %2431 = vmatmul.mubr.msk.f32.vlgmr.msra.gmra.mxu1 %vm423_vm3, %v2423_v57  ;;  %1521 = vrot.lane.b32.xlu1 %v2922_v23, %s2803_s14  ;;  %v2451_v61 = vld [vmem:[%s4023_s2 + $0x80] sm:$0xff] }
  0xa9   : > { %2435 = vmatprep.subr.msk.mxu1 %vm3048_vm4, %v348_v63  ;;  %542 = vmatprep.mubr.f32.mxu1 %v2797_v0 }
  0xaa   : > { %1525 = vrot.lane.b32.xlu0 %v3018_v44, %s2803_s14  ;;  %v332_v5 = vpop.permute.xlu1 %331  ;;  %518 = vmatprep.mubr.f32.mxu0 %v2797_v0 }
  0xab   : > { %v336_v6 = vpop.permute.xlu0 %335  ;;  %2428 = vmatmul.mubr.msk.f32.gmra.mxu0 %vm423_vm3, %v2420_v2  ;;  %v2452_v2 = vld [vmem:[%s4023_s2 + $0x88] sm:$0xff] }
  0xac   : > { %v347_v7 = vsel %vm221_vm1, %v336_v6, %v338_v62  ;;  %2432 = vmatmul.mubr.msk.f32.gmra.mxu1 %vm423_vm3, %v2424_v1  ;;  %1763 = vrot.lane.b32.xlu1 %v2976_v29, %s2804_s6  ;;  %v368_v1 = vld [vmem:[%s4023_s2 + $0x18] sm:$0xff] }
  0xad   : > { %2436 = vmatpush1.msk.msra.mxu1 %vm3068_vm5, %v347_v7  ;;  %548 = vmatprep.mubr.f32.mxu1 %v2797_v0 }
  0xae   : > { %1761 = vrot.lane.b32.xlu0 %v2912_v11, %s2804_s6  ;;  %v723_v12 = vpop.permute.xlu1 %722  ;;  %524 = vmatprep.mubr.f32.mxu0 %v2797_v0 }
  0xaf   : > { %v334_v13 = vpop.permute.xlu0 %333  ;;  %2429 = vmatmul.mubr.msk.f32.gmra.mxu0 %vm423_vm3, %v2421_v9 }
  0xb0   : > { %v346_v14 = vsel %vm221_vm1, %v332_v5, %v334_v13  ;;  %2433 = vmatmul.mubr.msk.f32.gmra.mxu1 %vm423_vm3, %v2425_v8  ;;  %1755 = vrot.lane.b32.xlu1 %v2920_v19, %s2804_s6  ;;  %v369_v8 = vld [vmem:[%s4023_s2 + $0x20] sm:$0xff] }
  0xb1   : > { %2437 = vmatprep.subr.msk.mxu1 %vm3048_vm4, %v346_v14  ;;  %554 = vmatprep.mubr.f32.mxu1 %v2797_v0 }
  0xb2   : > { %1759 = vrot.lane.b32.xlu0 %v2904_v4, %s2804_s6  ;;  %v330_v18 = vpop.permute.xlu1 %329  ;;  %530 = vmatprep.mubr.f32.mxu0 %v2797_v0 }
  0xb3   : > { %v725_v20 = vpop.permute.xlu0 %724  ;;  %v345_v22 = vsel %vm221_vm1, %v330_v18, %v332_v5  ;;  %2430 = vmatmul.mubr.msk.f32.gmra.mxu0 %vm423_vm3, %v2422_v17 }
  0xb4   : > { %v734_v25 = vsel %vm726_vm6, %v723_v12, %v725_v20  ;;  %2434 = vmatmul.mubr.msk.f32.gmra.mxu1 %vm423_vm3, %v2426_v16  ;;  %1955 = vrot.lane.b32.xlu1 %v2912_v11, %s2805_s22 }
  0xb5   : > { %2438 = vmatpush1.msk.msra.mxu1 %vm3068_vm5, %v345_v22  ;;  %2459 = vmatprep.subr.msk.mxu0 %vm3107_vm7, %v734_v25  ;;  %v372_v25 = vld [vmem:[%s4023_s2 + $0x38] sm:$0xff] }
  0xb6   : > { %1757 = vrot.lane.b32.xlu0 %v2986_v30, %s2804_s6  ;;  %v326_v28 = vpop.permute.xlu1 %325  ;;  %649 = vmatprep.mubr.f32.mxu1 %v2797_v0 }
  0xb7   : > { %v721_v32 = vpop.permute.xlu0 %720  ;;  %848 = vmatprep.mubr.f32.mxu0 %v2797_v0 }
  0xb8   : > { %v733_v33 = vsel %vm726_vm6, %v721_v32, %v723_v12  ;;  %1753 = vrot.lane.b32.xlu1 %v2910_v10, %s2804_s6 }
  0xb9   : > { %2460 = vmatpush1.msk.msra.mxu0 %vm3124_vm8, %v733_v33 }
  0xba   : > { %1957 = vrot.lane.b32.xlu0 %v2976_v29, %s2805_s22  ;;  %v717_v34 = vpop.permute.xlu1 %716 }
  0xbb   : > { %v328_v35 = vpop.permute.xlu0 %327 }
  0xbc   : > { %v344_v36 = vsel %vm221_vm1, %v326_v28, %v328_v35  ;;  %1749 = vrot.lane.b32.xlu1 %v2918_v15, %s2804_s6 }
  0xbd   : > { %2439 = vmatprep.subr.msk.mxu1 %vm3048_vm4, %v344_v36 }
  0xbe   : > { %1953 = vrot.lane.b32.xlu0 %v2904_v4, %s2805_s22  ;;  %v324_v37 = vpop.permute.xlu1 %323 }
  0xbf   : > { %v719_v38 = vpop.permute.xlu0 %718  ;;  %v343_v39 = vsel %vm221_vm1, %v324_v37, %v326_v28 }
  0xc0   : > { %v732_v40 = vsel %vm726_vm6, %v717_v34, %v719_v38  ;;  %1949 = vrot.lane.b32.xlu1 %v2920_v19, %s2805_s22  ;;  %2440 = vmatpush1.msk.msra.mxu1 %vm3068_vm5, %v343_v39  ;;  %v2458_v38 = vld [vmem:[%s4023_s2 + $0xb8] sm:$0xff]  ;;  %v2476_v39 = vld [vmem:[%s4023_s2 + $0xc8] sm:$0xff] }
  0xc1   : > { %2461 = vmatprep.subr.msk.mxu0 %vm3107_vm7, %v732_v40 }
  0xc2   : > { %1751 = vrot.lane.b32.xlu0 %v3000_v31, %s2804_s6  ;;  %v320_v29 = vpop.permute.xlu1 %319 }
  0xc3   : > { %v715_v41 = vpop.permute.xlu0 %714 }
  0xc4   : > { %v731_v42 = vsel %vm726_vm6, %v715_v41, %v717_v34  ;;  %1747 = vrot.lane.b32.xlu1 %v2924_v24, %s2804_s6  ;;  %v2457_v34 = vld [vmem:[%s4023_s2 + $0xb0] sm:$0xff] }
  0xc5   : > { %2462 = vmatpush1.msk.msra.mxu0 %vm3124_vm8, %v731_v42  ;;  %v2477_v42 = vld [vmem:[%s4023_s2 + $0xd0] sm:$0xff] }
  0xc6   : > { %1951 = vrot.lane.b32.xlu0 %v2986_v30, %s2805_s22  ;;  %v711_v43 = vpop.permute.xlu1 %710  ;;  %v365_v30 = vld [vmem:[%s4023_s2] sm:$0xff] }
  0xc7   : > { %v322_v45 = vpop.permute.xlu0 %321 }
  0xc8   : > { %v342_v46 = vsel %vm221_vm1, %v320_v29, %v322_v45  ;;  %1743 = vrot.lane.b32.xlu1 %v2929_v27, %s2804_s6 }
  0xc9   : > { %2441 = vmatprep.subr.msk.mxu1 %vm3048_vm4, %v342_v46 }
  0xca   : > { %1947 = vrot.lane.b32.xlu0 %v2910_v10, %s2805_s22  ;;  %v318_v47 = vpop.permute.xlu1 %317 }
  0xcb   : > { %v713_v48 = vpop.permute.xlu0 %712  ;;  %v341_v49 = vsel %vm221_vm1, %v318_v47, %v320_v29 }
  0xcc   : > { %v730_v50 = vsel %vm726_vm6, %v711_v43, %v713_v48  ;;  %1943 = vrot.lane.b32.xlu1 %v2918_v15, %s2805_s22  ;;  %2442 = vmatpush1.msk.msra.mxu1 %vm3068_vm5, %v341_v49  ;;  %v2478_v48 = vld [vmem:[%s4023_s2 + $0xd8] sm:$0xff]  ;;  %v2500_v49 = vld [vmem:[%s4023_s2 + $0x108] sm:$0xff] }
  0xcd   : > { %2463 = vmatprep.subr.msk.mxu0 %vm3107_vm7, %v730_v50  ;;  %2443 = vmatmul.mubr.msk.f32.vlgmr.msra.gmra.mxu1 %vm423_vm3, %v365_v30 }
  0xce   : > { %1745 = vrot.lane.b32.xlu0 %v3018_v44, %s2804_s6  ;;  %v705_v51 = vpop.permute.xlu1 %704  ;;  %655 = vmatprep.mubr.f32.mxu1 %v2797_v0 }
  0xcf   : > { %v709_v52 = vpop.permute.xlu0 %708 }
  0xd0   : > { %v729_v53 = vsel %vm726_vm6, %v709_v52, %v711_v43  ;;  %1741 = vrot.lane.b32.xlu1 %v2922_v23, %s2804_s6  ;;  %v2499_v43 = vld [vmem:[%s4023_s2 + $0x100] sm:$0xff] }
  0xd1   : > { %2464 = vmatpush1.msk.msra.mxu0 %vm3124_vm8, %v729_v53  ;;  %2444 = vmatmul.mubr.msk.f32.gmra.mxu1 %vm423_vm3, %v366_v54  ;;  %v2479_v53 = vld [vmem:[%s4023_s2 + $0xe0] sm:$0xff]  ;;  %v2501_v54 = vld [vmem:[%s4023_s2 + $0x110] sm:$0xff] }
  0xd2   : > { %1945 = vrot.lane.b32.xlu0 %v3000_v31, %s2805_s22  ;;  %v703_v55 = vpop.permute.xlu1 %702  ;;  %661 = vmatprep.mubr.f32.mxu1 %v2797_v0 }
  0xd3   : > { %v707_v56 = vpop.permute.xlu0 %706  ;;  %v727_v57 = vsel %vm726_vm6, %v703_v55, %v705_v51 }
  0xd4   : > { %v728_v58 = vsel %vm726_vm6, %v705_v51, %v707_v56  ;;  %1937 = vrot.lane.b32.xlu1 %v2929_v27, %s2805_s22 }
  0xd5   : > { %2465 = vmatprep.subr.msk.mxu0 %vm3107_vm7, %v728_v58  ;;  %2445 = vmatmul.mubr.msk.f32.gmra.mxu1 %vm423_vm3, %v367_v60  ;;  %v2480_v58 = vld [vmem:[%s4023_s2 + $0xe8] sm:$0xff]  ;;  %v2502_v60 = vld [vmem:[%s4023_s2 + $0x118] sm:$0xff] }
  0xd6   : > { %1941 = vrot.lane.b32.xlu0 %v2924_v24, %s2805_s22  ;;  %2466 = vmatpush1.msk.msra.mxu0 %vm3124_vm8, %v727_v57  ;;  %v936_v31 = vpop.permute.xlu1 %935 }
  0xd7   : > { %v934_v62 = vpop.permute.xlu0 %933  ;;  %2467 = vmatmul.mubr.msk.f32.vlgmr.msra.gmra.mxu0 %vm423_vm3, %v2451_v61  ;;  %667 = vmatprep.mubr.f32.mxu1 %v2797_v0 }
  0xd8   : > { %v945_v63 = vsel %vm937_vm9, %v934_v62, %v936_v31  ;;  %854 = vmatprep.mubr.f32.mxu0 %v2797_v0  ;;  %1935 = vrot.lane.b32.xlu1 %v2922_v23, %s2805_s22 }
  0xd9   : > { %2483 = vmatprep.subr.msk.mxu1 %vm3048_vm4, %v945_v63  ;;  %1181 = vmatprep.subr.mxu0 %v2912_v11  ;;  %v2453_v11 = vld [vmem:[%s4023_s2 + $0x90] sm:$0xff] }
  0xda   : > { %1939 = vrot.lane.b32.xlu0 %v3018_v44, %s2805_s22  ;;  %v928_v5 = vpop.permute.xlu1 %927  ;;  %2446 = vmatmul.mubr.msk.f32.gmra.mxu1 %vm423_vm3, %v368_v1  ;;  %v2481_v63 = vld [vmem:[%s4023_s2 + $0xf0] sm:$0xff]  ;;  %v2503_v1 = vld [vmem:[%s4023_s2 + $0x120] sm:$0xff] }
  0xdb   : > { %v932_v6 = vpop.permute.xlu0 %931  ;;  %2468 = vmatmul.mubr.msk.f32.gmra.mxu0 %vm423_vm3, %v2452_v2  ;;  %673 = vmatprep.mubr.f32.mxu1 %v2797_v0 }
  0xdc   : > { %v944_v7 = vsel %vm937_vm9, %v932_v6, %v934_v62  ;;  %860 = vmatprep.mubr.f32.mxu0 %v2797_v0  ;;  %1182 = vmatpush1.msra.mxu0 %v2904_v4  ;;  %v370_v4 = vld [vmem:[%s4023_s2 + $0x28] sm:$0xff] }
  0xdd   : > { %2484 = vmatpush1.msk.msra.mxu1 %vm3068_vm5, %v944_v7  ;;  %1183 = vmatprep.subr.mxu0 %v2920_v19  ;;  %v2454_v19 = vld [vmem:[%s4023_s2 + $0x98] sm:$0xff] }
  0xde   : > { %v926_v44 = vpop.permute.xlu1 %925  ;;  %2447 = vmatmul.mubr.msk.f32.gmra.mxu1 %vm423_vm3, %v369_v8  ;;  %1184 = vmatpush1.msra.mxu0 %v2910_v10  ;;  %v371_v10 = vld [vmem:[%s4023_s2 + $0x30] sm:$0xff]  ;;  %v2482_v8 = vld [vmem:[%s4023_s2 + $0xf8] sm:$0xff] }
  0xdf   : > { %v930_v9 = vpop.permute.xlu0 %929  ;;  %2469 = vmatmul.mubr.msk.f32.gmra.mxu0 %vm423_vm3, %v2453_v11  ;;  %v942_v12 = vsel %vm937_vm9, %v926_v44, %v928_v5  ;;  %679 = vmatprep.mubr.f32.mxu1 %v2797_v0  ;;  %v2504_v11 = vld [vmem:[%s4023_s2 + $0x128] sm:$0xff] }
  0xe0   : > { %v943_v13 = vsel %vm937_vm9, %v928_v5, %v930_v9  ;;  %866 = vmatprep.mubr.f32.mxu0 %v2797_v0  ;;  %1185 = vmatprep.subr.mxu0 %v2918_v15  ;;  %v2455_v15 = vld [vmem:[%s4023_s2 + $0xa0] sm:$0xff] }
  0xe1   : > { %2485 = vmatprep.subr.msk.mxu1 %vm3048_vm4, %v943_v13  ;;  %1186 = vmatpush1.msra.mxu0 %v2924_v24  ;;  %v2456_v24 = vld [vmem:[%s4023_s2 + $0xa8] sm:$0xff] }
  0xe2   : > { %2486 = vmatpush1.msk.msra.mxu1 %vm3068_vm5, %v942_v12  ;;  %v924_v14 = vpop.permute.xlu1 %923  ;;  %1187 = vmatprep.subr.mxu0 %v2929_v27  ;;  %v2505_v12 = vld [vmem:[%s4023_s2 + $0x130] sm:$0xff] }
  0xe3   : > { %v922_v16 = vpop.permute.xlu0 %921  ;;  %2448 = vmatmul.mubr.msk.f32.gmra.mxu1 %vm423_vm3, %v370_v4  ;;  %2470 = vmatmul.mubr.msk.f32.gmra.mxu0 %vm423_vm3, %v2454_v19 }
  0xe4   : > { %v941_v17 = vsel %vm937_vm9, %v922_v16, %v924_v14  ;;  %685 = vmatprep.mubr.f32.mxu1 %v2797_v0  ;;  %872 = vmatprep.mubr.f32.mxu0 %v2797_v0  ;;  %v2506_v14 = vld [vmem:[%s4023_s2 + $0x138] sm:$0xff] }
  0xe5   : > { %2487 = vmatprep.subr.msk.mxu1 %vm3048_vm4, %v941_v17  ;;  %1188 = vmatpush1.msra.mxu0 %v2922_v23  ;;  %v2475_v23 = vld [vmem:[%s4023_s2 + $0xc0] sm:$0xff] }
  0xe6   : > { %v916_v18 = vpop.permute.xlu1 %915 }
  0xe7   : > { %v920_v20 = vpop.permute.xlu0 %919  ;;  %2449 = vmatmul.mubr.msk.f32.gmra.mxu1 %vm423_vm3, %v371_v10  ;;  %2471 = vmatmul.mubr.msk.f32.gmra.mxu0 %vm423_vm3, %v2455_v15  ;;  %v2515_v10 = vld [vmem:[%s4023_s2 + $0x140] sm:$0xff] }
  0xe8   : > { %v940_v22 = vsel %vm937_vm9, %v920_v20, %v922_v16  ;;  %691 = vmatprep.mubr.f32.mxu1 %v2797_v0  ;;  %878 = vmatprep.mubr.f32.mxu0 %v2797_v0 }
  0xe9   : > { %2488 = vmatpush1.msk.msra.mxu1 %vm3068_vm5, %v940_v22  ;;  %v2806_v22 = vmov 0  }
  0xea   : > { %v914_v27 = vpop.permute.xlu1 %913  ;;  %2669 = vset.pattern.permute.xlu0 %v2806_v22  ;;  %2670 = vset.pattern.permute.xlu1 %v2806_v22  ;;  %v2563_v22 = vld [vmem:[%s4023_s2 + $0x1c0] sm:$0xff] }
  0xeb   : > { %v918_v28 = vpop.permute.xlu0 %917  ;;  %2450 = vmatmul.mubr.msk.f32.gmra.mxu1 %vm423_vm3, %v372_v25  ;;  %2472 = vmatmul.mubr.msk.f32.gmra.mxu0 %vm423_vm3, %v2456_v24  ;;  %v938_v32 = vsel %vm937_vm9, %v914_v27, %v916_v18  ;;  %v2146_v25 = vld [vmem:[%s4024_s3] sm:$0xff]  ;;  %v2516_v27 = vld [vmem:[%s4023_s2 + $0x148] sm:$0xff] }
  0xec   : > { %v939_v33 = vsel %vm937_vm9, %v916_v18, %v918_v28  ;;  %884 = vmatprep.mubr.f32.mxu0 %v2797_v0  ;;  %1059 = vmatprep.mubr.f32.mxu1 %v2797_v0 }
  0xed   : > { %2489 = vmatprep.subr.msk.mxu1 %vm3048_vm4, %v939_v33  ;;  %2156 = vperm.xlu0 %2669, %v2146_v25   ;;  %v2147_v33 = vld [vmem:[%s4024_s3 + $0x8] sm:$0xff] }
  0xee   : > { %2490 = vmatpush1.msk.msra.mxu1 %vm3068_vm5, %v938_v32  ;;  %v1333_v35 = vpop.permute.xlu1 %1332  ;;  %2161 = vperm.xlu1 %2670, %v2147_v33  }
  0xef   : > { %v1331_v36 = vpop.permute.xlu0 %1330  ;;  %2473 = vmatmul.mubr.msk.f32.gmra.mxu0 %vm423_vm3, %v2457_v34  ;;  %2491 = vmatmul.mubr.msk.f32.vlgmr.msra.gmra.mxu1 %vm423_vm3, %v2475_v23  ;;  %v2517_v23 = vld [vmem:[%s4023_s2 + $0x150] sm:$0xff] }
  0xf0   : > { %v1342_v37 = vsel %vm1334_vm10, %v1331_v36, %v1333_v35  ;;  %890 = vmatprep.mubr.f32.mxu0 %v2797_v0  ;;  %1065 = vmatprep.mubr.f32.mxu1 %v2797_v0 }
  0xf1   : > { %2523 = vmatprep.subr.msk.mxu1 %vm3107_vm7, %v1342_v37  ;;  %2171 = vperm.xlu0 %2669, %v2149_v3   ;;  %v2583_v3 = vld [vmem:[%s4023_s2 + $0x220] sm:$0xff] }
  0xf2   : > { %v1325_v40 = vpop.permute.xlu1 %1324 }
  0xf3   : > { %v1329_v29 = vpop.permute.xlu0 %1328  ;;  %2474 = vmatmul.mubr.msk.f32.gmra.mxu0 %vm423_vm3, %v2458_v38  ;;  %2492 = vmatmul.mubr.msk.f32.gmra.mxu1 %vm423_vm3, %v2476_v39  ;;  %v2539_v38 = vld [vmem:[%s4023_s2 + $0x180] sm:$0xff]  ;;  %v2148_v39 = vld [vmem:[%s4024_s3 + $0x10] sm:$0xff] }
  0xf4   : > { %v1341_v41 = vsel %vm1334_vm10, %v1329_v29, %v1331_v36  ;;  %1071 = vmatprep.mubr.f32.mxu1 %v2797_v0  ;;  %1221 = vmatprep.mubr.f32.mxu0 %v2797_v0  ;;  %v2518_v29 = vld [vmem:[%s4023_s2 + $0x158] sm:$0xff] }
  0xf5   : > { %2524 = vmatpush1.msk.msra.mxu1 %vm3124_vm8, %v1341_v41  ;;  %2166 = vperm.xlu1 %2670, %v2148_v39   ;;  %v2579_v39 = vld [vmem:[%s4023_s2 + $0x200] sm:$0xff] }
  0xf6   : > { %v1542_v45 = vpop.permute.xlu1 %1541 }
  0xf7   : > { %v1327_v46 = vpop.permute.xlu0 %1326  ;;  %2493 = vmatmul.mubr.msk.f32.gmra.mxu1 %vm423_vm3, %v2477_v42  ;;  %2507 = vmatmul.mubr.msk.f32.vlgmr.msra.gmra.mxu0 %vm423_vm3, %v2499_v43  ;;  %v2540_v42 = vld [vmem:[%s4023_s2 + $0x188] sm:$0xff] }
  0xf8   : > { %v1340_v47 = vsel %vm1334_vm10, %v1325_v40, %v1327_v46  ;;  %1077 = vmatprep.mubr.f32.mxu1 %v2797_v0  ;;  %1227 = vmatprep.mubr.f32.mxu0 %v2797_v0 }
  0xf9   : > { %2525 = vmatprep.subr.msk.mxu1 %vm3107_vm7, %v1340_v47 }
  0xfa   : > { %v1323_v50 = vpop.permute.xlu1 %1322 }
  0xfb   : > { %v1544_v30 = vpop.permute.xlu0 %1543  ;;  %2494 = vmatmul.mubr.msk.f32.gmra.mxu1 %vm423_vm3, %v2478_v48  ;;  %2508 = vmatmul.mubr.msk.f32.gmra.mxu0 %vm423_vm3, %v2500_v49  ;;  %v1339_v51 = vsel %vm1334_vm10, %v1323_v50, %v1325_v40  ;;  %v2541_v48 = vld [vmem:[%s4023_s2 + $0x190] sm:$0xff]  ;;  %v2150_v49 = vld [vmem:[%s4024_s3 + $0x20] sm:$0xff]  ;;  %v2151_v50 = vld [vmem:[%s4024_s3 + $0x28] sm:$0xff] }
  0xfc   : > { %v1553_v52 = vsel %vm1545_vm11, %v1542_v45, %v1544_v30  ;;  %1083 = vmatprep.mubr.f32.mxu1 %v2797_v0  ;;  %1233 = vmatprep.mubr.f32.mxu0 %v2797_v0 }
  0xfd   : > { %2526 = vmatpush1.msk.msra.mxu1 %vm3124_vm8, %v1339_v51  ;;  %2547 = vmatprep.subr.msk.mxu0 %vm3048_vm4, %v1553_v52  ;;  %v2520_v51 = vld [vmem:[%s4023_s2 + $0x168] sm:$0xff] }
  0xfe   : > { %v1319_v55 = vpop.permute.xlu1 %1318  ;;  %2176 = vperm.xlu1 %2670, %v2150_v49   ;;  %2181 = vperm.xlu0 %2669, %v2151_v50  }
  0xff   : > { %v1540_v56 = vpop.permute.xlu0 %1539  ;;  %2495 = vmatmul.mubr.msk.f32.gmra.mxu1 %vm423_vm3, %v2479_v53  ;;  %2509 = vmatmul.mubr.msk.f32.gmra.mxu0 %vm423_vm3, %v2501_v54  ;;  %v2542_v54 = vld [vmem:[%s4023_s2 + $0x198] sm:$0xff] }
 0x100   : > { %v1552_v57 = vsel %vm1545_vm11, %v1540_v56, %v1542_v45  ;;  %1089 = vmatprep.mubr.f32.mxu1 %v2797_v0  ;;  %1239 = vmatprep.mubr.f32.mxu0 %v2797_v0  ;;  %v2519_v45 = vld [vmem:[%s4023_s2 + $0x160] sm:$0xff]  ;;  %v2153_v56 = vld [vmem:[%s4024_s3 + $0x38] sm:$0xff] }
 0x101   : > { %2548 = vmatpush1.msk.msra.mxu0 %vm3068_vm5, %v1552_v57 }
 0x102   : > { %v1536_v61 = vpop.permute.xlu1 %1535  ;;  %2191 = vperm.xlu0 %2669, %v2153_v56  }
 0x103   : > { %v1321_v31 = vpop.permute.xlu0 %1320  ;;  %2496 = vmatmul.mubr.msk.f32.gmra.mxu1 %vm423_vm3, %v2480_v58  ;;  %2510 = vmatmul.mubr.msk.f32.gmra.mxu0 %vm423_vm3, %v2502_v60  ;;  %v2521_v58 = vld [vmem:[%s4023_s2 + $0x170] sm:$0xff] }
 0x104   : > { %v1338_v62 = vsel %vm1334_vm10, %v1319_v55, %v1321_v31  ;;  %1095 = vmatprep.mubr.f32.mxu1 %v2797_v0  ;;  %1245 = vmatprep.mubr.f32.mxu0 %v2797_v0 }
 0x105   : > { %2527 = vmatprep.subr.msk.mxu1 %vm3107_vm7, %v1338_v62  ;;  %v2543_v62 = vld [vmem:[%s4023_s2 + $0x1a0] sm:$0xff] }
 0x106   : > { %v1317_v2 = vpop.permute.xlu1 %1316 }
 0x107   : > { %v1538_v5 = vpop.permute.xlu0 %1537  ;;  %2497 = vmatmul.mubr.msk.f32.gmra.mxu1 %vm423_vm3, %v2481_v63  ;;  %2511 = vmatmul.mubr.msk.f32.gmra.mxu0 %vm423_vm3, %v2503_v1  ;;  %v1337_v6 = vsel %vm1334_vm10, %v1317_v2, %v1319_v55  ;;  %v2152_v55 = vld [vmem:[%s4024_s3 + $0x30] sm:$0xff]  ;;  %v2522_v1 = vld [vmem:[%s4023_s2 + $0x178] sm:$0xff] }
 0x108   : > { %v1551_v7 = vsel %vm1545_vm11, %v1536_v61, %v1538_v5  ;;  %1101 = vmatprep.mubr.f32.mxu1 %v2797_v0  ;;  %1251 = vmatprep.mubr.f32.mxu0 %v2797_v0 }
 0x109   : > { %2528 = vmatpush1.msk.msra.mxu1 %vm3124_vm8, %v1337_v6  ;;  %2549 = vmatprep.subr.msk.mxu0 %vm3048_vm4, %v1551_v7  ;;  %v2544_v6 = vld [vmem:[%s4023_s2 + $0x1a8] sm:$0xff] }
 0x10a   : > { %v1313_v44 = vpop.permute.xlu1 %1312  ;;  %2186 = vperm.xlu1 %2670, %v2152_v55  }
 0x10b   : > { %2498 = vmatmul.mubr.msk.f32.gmra.mxu1 %vm423_vm3, %v2482_v8  ;;  %2512 = vmatmul.mubr.msk.f32.gmra.mxu0 %vm423_vm3, %v2504_v11 }
 0x10c   : > { %v1534_v9 = vpop.permute.xlu0 %1533  ;;  %1257 = vmatprep.mubr.f32.mxu0 %v2797_v0  ;;  %1456 = vmatprep.mubr.f32.mxu1 %v2797_v0 }
 0x10d   : > { %v1550_v13 = vsel %vm1545_vm11, %v1534_v9, %v1536_v61 }
 0x10e   : > { %2550 = vmatpush1.msk.msra.mxu0 %vm3068_vm5, %v1550_v13  ;;  %v1530_v4 = vpop.permute.xlu1 %1529 }
 0x10f   : > { %2513 = vmatmul.mubr.msk.f32.gmra.mxu0 %vm423_vm3, %v2505_v12 }
 0x110   : > { %v1315_v19 = vpop.permute.xlu0 %1314  ;;  %1263 = vmatprep.mubr.f32.mxu0 %v2797_v0 }
 0x111   : > { %v1336_v16 = vsel %vm1334_vm10, %v1313_v44, %v1315_v19  ;;  %v2546_v19 = vld [vmem:[%s4023_s2 + $0x1b8] sm:$0xff] }
 0x112   : > { %2529 = vmatprep.subr.msk.mxu1 %vm3107_vm7, %v1336_v16  ;;  %v1311_v17 = vpop.permute.xlu1 %1310 }
 0x113   : > { %2514 = vmatmul.mubr.msk.f32.gmra.mxu0 %vm423_vm3, %v2506_v14  ;;  %v1335_v15 = vsel %vm1334_vm10, %v1311_v17, %v1313_v44  ;;  %v2545_v44 = vld [vmem:[%s4023_s2 + $0x1b0] sm:$0xff] }
 0x114   : > { %v1532_v18 = vpop.permute.xlu0 %1531  ;;  %1667 = vmatprep.mubr.f32.mxu0 %v2797_v0  ;;  %2530 = vmatpush1.msk.msra.mxu1 %vm3124_vm8, %v1335_v15 }
 0x115   : > { %v1549_v20 = vsel %vm1545_vm11, %v1530_v4, %v1532_v18  ;;  %2531 = vmatmul.mubr.msk.f32.vlgmr.msra.gmra.mxu1 %vm423_vm3, %v2515_v10 }
 0x116   : > { %2551 = vmatprep.subr.msk.mxu0 %vm3048_vm4, %v1549_v20  ;;  %v1524_v24 = vpop.permute.xlu1 %1523  ;;  %1462 = vmatprep.mubr.f32.mxu1 %v2797_v0 }
 0x118   : > { %v1528_v28 = vpop.permute.xlu0 %1527 }
 0x119   : > { %v1548_v32 = vsel %vm1545_vm11, %v1528_v28, %v1530_v4  ;;  %2532 = vmatmul.mubr.msk.f32.gmra.mxu1 %vm423_vm3, %v2516_v27  ;;  %v2564_v28 = vld [vmem:[%s4023_s2 + $0x1c8] sm:$0xff] }
 0x11a   : > { %2552 = vmatpush1.msk.msra.mxu0 %vm3068_vm5, %v1548_v32  ;;  %v1522_v34 = vpop.permute.xlu1 %1521  ;;  %1468 = vmatprep.mubr.f32.mxu1 %v2797_v0 }
 0x11b   : > { %v1546_v35 = vsel %vm1545_vm11, %v1522_v34, %v1524_v24 }
 0x11c   : > { %v1526_v36 = vpop.permute.xlu0 %1525 }
 0x11d   : > { %v1547_v37 = vsel %vm1545_vm11, %v1524_v24, %v1526_v36  ;;  %2533 = vmatmul.mubr.msk.f32.gmra.mxu1 %vm423_vm3, %v2517_v23  ;;  %v2565_v23 = vld [vmem:[%s4023_s2 + $0x1d0] sm:$0xff] }
 0x11e   : > { %2553 = vmatprep.subr.msk.mxu0 %vm3048_vm4, %v1547_v37  ;;  %v1764_v40 = vpop.permute.xlu1 %1763  ;;  %1474 = vmatprep.mubr.f32.mxu1 %v2797_v0 }
 0x11f   : > { %2554 = vmatpush1.msk.msra.mxu0 %vm3068_vm5, %v1546_v35 }
 0x120   : > { %v1762_v41 = vpop.permute.xlu0 %1761  ;;  %2555 = vmatmul.mubr.msk.f32.vlgmr.msra.gmra.mxu0 %vm423_vm3, %v2539_v38 }
 0x121   : > { %v1773_v59 = vsel %vm1765_vm12, %v1762_v41, %v1764_v40  ;;  %1673 = vmatprep.mubr.f32.mxu0 %v2797_v0  ;;  %2534 = vmatmul.mubr.msk.f32.gmra.mxu1 %vm423_vm3, %v2518_v29  ;;  %v2566_v40 = vld [vmem:[%s4023_s2 + $0x1d8] sm:$0xff]  ;;  %v2580_v29 = vld [vmem:[%s4023_s2 + $0x208] sm:$0xff] }
 0x122   : > { %1830 = vmatprep.subr.mxu1 %v1773_v59  ;;  %v1756_v43 = vpop.permute.xlu1 %1755  ;;  %1480 = vmatprep.mubr.f32.mxu1 %v2797_v0  ;;  %v2582_v59 = vld [vmem:[%s4023_s2 + $0x218] sm:$0xff] }
 0x124   : > { %v1760_v46 = vpop.permute.xlu0 %1759  ;;  %2556 = vmatmul.mubr.msk.f32.gmra.mxu0 %vm423_vm3, %v2540_v42  ;;  %v2569_v42 = vld [vmem:[%s4023_s2 + $0x1f0] sm:$0xff] }
 0x125   : > { %v1772_v47 = vsel %vm1765_vm12, %v1760_v46, %v1762_v41  ;;  %1679 = vmatprep.mubr.f32.mxu0 %v2797_v0  ;;  %2535 = vmatmul.mubr.msk.f32.gmra.mxu1 %vm423_vm3, %v2519_v45  ;;  %v2568_v41 = vld [vmem:[%s4023_s2 + $0x1e8] sm:$0xff]  ;;  %v2585_v46 = vld [vmem:[%s4023_s2 + $0x230] sm:$0xff] }
 0x126   : > { %v1956_v30 = vpop.permute.xlu1 %1955  ;;  %1831 = vmatpush1.msra.mxu1 %v1772_v47  ;;  %1486 = vmatprep.mubr.f32.mxu1 %v2797_v0  ;;  %v2584_v45 = vld [vmem:[%s4023_s2 + $0x228] sm:$0xff]  ;;  %v2586_v47 = vld [vmem:[%s4023_s2 + $0x238] sm:$0xff] }
 0x128   : > { %v1758_v52 = vpop.permute.xlu0 %1757  ;;  %2557 = vmatmul.mubr.msk.f32.gmra.mxu0 %vm423_vm3, %v2541_v48 }
 0x129   : > { %v1771_v53 = vsel %vm1765_vm12, %v1756_v43, %v1758_v52  ;;  %1685 = vmatprep.mubr.f32.mxu0 %v2797_v0  ;;  %2536 = vmatmul.mubr.msk.f32.gmra.mxu1 %vm423_vm3, %v2520_v51 }
 0x12a   : > { %1832 = vmatprep.subr.mxu1 %v1771_v53  ;;  %v1754_v57 = vpop.permute.xlu1 %1753  ;;  %1492 = vmatprep.mubr.f32.mxu1 %v2797_v0 }
 0x12b   : > { %v1770_v60 = vsel %vm1765_vm12, %v1754_v57, %v1756_v43  ;;  %v2570_v43 = vld [vmem:[%s4023_s2 + $0x1f8] sm:$0xff] }
 0x12c   : > { %v1958_v61 = vpop.permute.xlu0 %1957  ;;  %2558 = vmatmul.mubr.msk.f32.gmra.mxu0 %vm423_vm3, %v2542_v54  ;;  %1833 = vmatpush1.msra.mxu1 %v1770_v60 }
 0x12d   : > { %v1967_v31 = vsel %vm1959_vm13, %v1956_v30, %v1958_v61  ;;  %1691 = vmatprep.mubr.f32.mxu0 %v2797_v0  ;;  %2537 = vmatmul.mubr.msk.f32.gmra.mxu1 %vm423_vm3, %v2521_v58 }
 0x12e   : > { %2587 = vmatprep.subr.msk.mxu0 %vm3107_vm7, %v1967_v31  ;;  %v1750_v63 = vpop.permute.xlu1 %1749  ;;  %1498 = vmatprep.mubr.f32.mxu1 %v2797_v0 }
 0x130   : > { %v1954_v2 = vpop.permute.xlu0 %1953  ;;  %2559 = vmatmul.mubr.msk.f32.gmra.mxu0 %vm423_vm3, %v2543_v62 }
 0x131   : > { %v1966_v5 = vsel %vm1959_vm13, %v1954_v2, %v1956_v30  ;;  %1697 = vmatprep.mubr.f32.mxu0 %v2797_v0  ;;  %2538 = vmatmul.mubr.msk.f32.gmra.mxu1 %vm423_vm3, %v2522_v1 }
 0x132   : > { %2588 = vmatpush1.msk.msra.mxu0 %vm3124_vm8, %v1966_v5  ;;  %v1950_v7 = vpop.permute.xlu1 %1949  ;;  %1870 = vmatprep.mubr.f32.mxu1 %v2797_v0 }
 0x134   : > { %v1752_v8 = vpop.permute.xlu0 %1751  ;;  %2560 = vmatmul.mubr.msk.f32.gmra.mxu0 %vm423_vm3, %v2544_v6 }
 0x135   : > { %v1769_v11 = vsel %vm1765_vm12, %v1750_v63, %v1752_v8  ;;  %1703 = vmatprep.mubr.f32.mxu0 %v2797_v0 }
 0x136   : > { %1834 = vmatprep.subr.mxu1 %v1769_v11  ;;  %v1748_v9 = vpop.permute.xlu1 %1747 }
 0x137   : > { %v1768_v12 = vsel %vm1765_vm12, %v1748_v9, %v1750_v63 }
 0x138   : > { %v1952_v13 = vpop.permute.xlu0 %1951  ;;  %2561 = vmatmul.mubr.msk.f32.gmra.mxu0 %vm423_vm3, %v2545_v44  ;;  %1835 = vmatpush1.msra.mxu1 %v1768_v12 }
 0x139   : > { %v1965_v4 = vsel %vm1959_vm13, %v1950_v7, %v1952_v13  ;;  %1709 = vmatprep.mubr.f32.mxu0 %v2797_v0 }
 0x13a   : > { %2589 = vmatprep.subr.msk.mxu0 %vm3107_vm7, %v1965_v4  ;;  %v1744_v14 = vpop.permute.xlu1 %1743 }
 0x13c   : > { %v1948_v16 = vpop.permute.xlu0 %1947  ;;  %2562 = vmatmul.mubr.msk.f32.gmra.mxu0 %vm423_vm3, %v2546_v19 }
 0x13d   : > { %v1964_v17 = vsel %vm1959_vm13, %v1948_v16, %v1950_v7  ;;  %2081 = vmatprep.mubr.f32.mxu0 %v2797_v0 }
 0x13e   : > { %2590 = vmatpush1.msk.msra.mxu0 %vm3124_vm8, %v1964_v17  ;;  %v1944_v10 = vpop.permute.xlu1 %1943 }
 0x140   : > { %v1746_v15 = vpop.permute.xlu0 %1745 }
 0x141   : > { %v1767_v18 = vsel %vm1765_vm12, %v1744_v14, %v1746_v15 }
 0x142   : > { %1836 = vmatprep.subr.mxu1 %v1767_v18  ;;  %v1742_v20 = vpop.permute.xlu1 %1741 }
 0x143   : > { %v1766_v25 = vsel %vm1765_vm12, %v1742_v20, %v1744_v14 }
 0x144   : > { %v1946_v24 = vpop.permute.xlu0 %1945  ;;  %1837 = vmatpush1.msra.mxu1 %v1766_v25 }
 0x145   : > { %v1963_v27 = vsel %vm1959_vm13, %v1944_v10, %v1946_v24  ;;  %2571 = vmatmul.mubr.msk.f32.vlgmr.msra.gmra.mxu1 %vm423_vm3, %v2563_v22 }
 0x146   : > { %2591 = vmatprep.subr.msk.mxu0 %vm3107_vm7, %v1963_v27  ;;  %1876 = vmatprep.mubr.f32.mxu1 %v2797_v0  ;;  %v1938_v32 = vpop.permute.xlu1 %1937 }
 0x148   : > { %v1942_v33 = vpop.permute.xlu0 %1941 }
 0x149   : > { %v1962_v34 = vsel %vm1959_vm13, %v1942_v33, %v1944_v10  ;;  %2572 = vmatmul.mubr.msk.f32.gmra.mxu1 %vm423_vm3, %v2564_v28 }
 0x14a   : > { %2592 = vmatpush1.msk.msra.mxu0 %vm3124_vm8, %v1962_v34  ;;  %1882 = vmatprep.mubr.f32.mxu1 %v2797_v0  ;;  %v1936_v35 = vpop.permute.xlu1 %1935 }
 0x14b   : > { %v1960_v37 = vsel %vm1959_vm13, %v1936_v35, %v1938_v32 }
 0x14c   : > { %v1940_v36 = vpop.permute.xlu0 %1939 }
 0x14d   : > { %v1961_v38 = vsel %vm1959_vm13, %v1938_v32, %v1940_v36  ;;  %2573 = vmatmul.mubr.msk.f32.gmra.mxu1 %vm423_vm3, %v2565_v23 }
 0x14e   : > { %2593 = vmatprep.subr.msk.mxu0 %vm3107_vm7, %v1961_v38  ;;  %1888 = vmatprep.mubr.f32.mxu1 %v2797_v0 }
 0x14f   : > { %2594 = vmatpush1.msk.msra.mxu0 %vm3124_vm8, %v1960_v37 }
 0x150   : > { %2595 = vmatmul.mubr.msk.f32.vlgmr.msra.gmra.mxu0 %vm423_vm3, %v2579_v39 }
 0x151   : > { %2087 = vmatprep.mubr.f32.mxu0 %v2797_v0  ;;  %2574 = vmatmul.mubr.msk.f32.gmra.mxu1 %vm423_vm3, %v2566_v40 }
 0x152   : > { %1894 = vmatprep.mubr.f32.mxu1 %v2797_v0 }
 0x154   : > { %2596 = vmatmul.mubr.msk.f32.gmra.mxu0 %vm423_vm3, %v2580_v29 }
 0x155   : > { %2093 = vmatprep.mubr.f32.mxu0 %v2797_v0  ;;  %2575 = vmatmul.mubr.msk.f32.gmra.mxu1 %vm423_vm3, %v2567_v21 }
 0x156   : > { %1900 = vmatprep.mubr.f32.mxu1 %v2797_v0 }
 0x158   : > { %2597 = vmatmul.mubr.msk.f32.gmra.mxu0 %vm423_vm3, %v2581_v26 }
 0x159   : > { %2099 = vmatprep.mubr.f32.mxu0 %v2797_v0  ;;  %2576 = vmatmul.mubr.msk.f32.gmra.mxu1 %vm423_vm3, %v2568_v41 }
 0x15a   : > { %1906 = vmatprep.mubr.f32.mxu1 %v2797_v0 }
 0x15c   : > { %2598 = vmatmul.mubr.msk.f32.gmra.mxu0 %vm423_vm3, %v2582_v59 }
 0x15d   : > { %2105 = vmatprep.mubr.f32.mxu0 %v2797_v0  ;;  %2577 = vmatmul.mubr.msk.f32.gmra.mxu1 %vm423_vm3, %v2569_v42 }
 0x15e   : > { %1912 = vmatprep.mubr.f32.mxu1 %v2797_v0 }
 0x160   : > { %2599 = vmatmul.mubr.msk.f32.gmra.mxu0 %vm423_vm3, %v2583_v3 }
 0x161   : > { %2111 = vmatprep.mubr.f32.mxu0 %v2797_v0  ;;  %2578 = vmatmul.mubr.msk.f32.gmra.mxu1 %vm423_vm3, %v2570_v43 }
 0x164   : > { %2600 = vmatmul.mubr.msk.f32.gmra.mxu0 %vm423_vm3, %v2584_v45 }
 0x165   : > { %2117 = vmatprep.mubr.f32.mxu0 %v2797_v0 }
 0x167   : > { %v514_v30 = vpop.f32.mrf.mxu0 }
 0x168   : > { %2601 = vmatmul.mubr.msk.f32.gmra.mxu0 %vm423_vm3, %v2585_v46  ;;  %v538_v48 = vpop.f32.mrf.mxu1 }
 0x169   : > { %2123 = vmatprep.mubr.f32.mxu0 %v2797_v0  ;;  %v516_v52 = vpop.f32.mrf.mxu0 }
 0x16a   : > { %v540_v49 = vpop.f32.mrf.mxu1 }
 0x16b   : > { %v520_v54 = vpop.f32.mrf.mxu0 }
 0x16c   : > { %2602 = vmatmul.mubr.msk.f32.gmra.mxu0 %vm423_vm3, %v2586_v47  ;;  %v544_v50 = vpop.f32.mrf.mxu1 }
 0x16d   : > { %v522_v56 = vpop.f32.mrf.mxu0 }
 0x16e   : > { %v546_v51 = vpop.f32.mrf.mxu1 }
 0x16f   : > { %v526_v58 = vpop.f32.mrf.mxu0 }
 0x170   : > { %v550_v53 = vpop.f32.mrf.mxu1 }
 0x171   : > { %v528_v0 = vpop.f32.mrf.mxu0 }
 0x172   : > { %v552_v55 = vpop.f32.mrf.mxu1 }
 0x173   : > { %v532_v31 = vpop.f32.mrf.mxu0 }
 0x174   : > { %v556_v57 = vpop.f32.mrf.mxu1 }
 0x175   : > { %v534_v5 = vpop.f32.mrf.mxu0 }
 0x176   : > { %v558_v60 = vpop.f32.mrf.mxu1 }
 0x18d   : > { %v651_v61 = vpop.f32.mrf.mxu1 }
 0x18e   : > { %v652_v62 = vadd.f32 %v651_v61, %v514_v30 }
 0x18f   : > { %v653_v63 = vpop.f32.mrf.mxu1 }
 0x190   : > { %v654_v1 = vadd.f32 %v653_v63, %v516_v52 }
 0x191   : > { %v657_v2 = vpop.f32.mrf.mxu1 }
 0x192   : > { %v658_v6 = vadd.f32 %v657_v2, %v520_v54 }
 0x193   : > { %v659_v7 = vpop.f32.mrf.mxu1 }
 0x194   : > { %v660_v8 = vadd.f32 %v659_v7, %v522_v56 }
 0x195   : > { %v663_v11 = vpop.f32.mrf.mxu1 }
 0x196   : > { %v664_v9 = vadd.f32 %v663_v11, %v526_v58 }
 0x197   : > { %v850_v44 = vpop.f32.mrf.mxu0  ;;  %v665_v13 = vpop.f32.mrf.mxu1 }
 0x198   : > { %v3653_v12 = vadd.f32 %v850_v44, %v652_v62  ;;  %v666_v19 = vadd.f32 %v665_v13, %v528_v0 }
 0x199   : > { %v852_v4 = vpop.f32.mrf.mxu0 }
 0x19a   : > { %v3655_v14 = vadd.f32 %v852_v4, %v654_v1  ;;  %v669_v16 = vpop.f32.mrf.mxu1 }
 0x19b   : > { %v856_v17 = vpop.f32.mrf.mxu0  ;;  %v670_v10 = vadd.f32 %v669_v16, %v532_v31 }
 0x19c   : > { %v3657_v15 = vadd.f32 %v856_v17, %v658_v6  ;;  %v671_v18 = vpop.f32.mrf.mxu1 }
 0x19d   : > { %v858_v20 = vpop.f32.mrf.mxu0  ;;  %v672_v22 = vadd.f32 %v671_v18, %v534_v5 }
 0x19e   : > { %v3659_v25 = vadd.f32 %v858_v20, %v660_v8  ;;  %v675_v24 = vpop.f32.mrf.mxu1 }
 0x19f   : > { %v862_v27 = vpop.f32.mrf.mxu0  ;;  %v676_v28 = vadd.f32 %v675_v24, %v538_v48 }
 0x1a0   : > { %v3661_v32 = vadd.f32 %v862_v27, %v664_v9  ;;  %v677_v33 = vpop.f32.mrf.mxu1 }
 0x1a1   : > { %v864_v34 = vpop.f32.mrf.mxu0  ;;  %v678_v23 = vadd.f32 %v677_v33, %v540_v49 }
 0x1a2   : > { %v3663_v35 = vadd.f32 %v864_v34, %v666_v19 }
 0x1a3   : > { %v681_v36 = vpop.f32.mrf.mxu1  ;;  %v868_v37 = vpop.f32.mrf.mxu0 }
 0x1a4   : > { %v682_v38 = vadd.f32 %v681_v36, %v544_v50  ;;  %v3665_v39 = vadd.f32 %v868_v37, %v670_v10 }
 0x1a5   : > { %v683_v40 = vpop.f32.mrf.mxu1  ;;  %v870_v29 = vpop.f32.mrf.mxu0 }
 0x1a6   : > { %v684_v21 = vadd.f32 %v683_v40, %v546_v51  ;;  %v3667_v26 = vadd.f32 %v870_v29, %v672_v22 }
 0x1a7   : > { %v687_v41 = vpop.f32.mrf.mxu1  ;;  %v874_v59 = vpop.f32.mrf.mxu0 }
 0x1a8   : > { %v688_v42 = vadd.f32 %v687_v41, %v550_v53  ;;  %v3669_v3 = vadd.f32 %v874_v59, %v676_v28 }
 0x1a9   : > { %v689_v43 = vpop.f32.mrf.mxu1  ;;  %v876_v45 = vpop.f32.mrf.mxu0 }
 0x1aa   : > { %v690_v46 = vadd.f32 %v689_v43, %v552_v55  ;;  %v3671_v47 = vadd.f32 %v876_v45, %v678_v23 }
 0x1ab   : > { %v693_v48 = vpop.f32.mrf.mxu1  ;;  %v880_v49 = vpop.f32.mrf.mxu0 }
 0x1ac   : > { %v694_v50 = vadd.f32 %v693_v48, %v556_v57  ;;  %v3673_v30 = vadd.f32 %v880_v49, %v682_v38 }
 0x1ad   : > { %v695_v52 = vpop.f32.mrf.mxu1  ;;  %v882_v54 = vpop.f32.mrf.mxu0 }
 0x1ae   : > { %v696_v51 = vadd.f32 %v695_v52, %v558_v60  ;;  %v3675_v56 = vadd.f32 %v882_v54, %v684_v21 }
 0x1af   : > { %v886_v58 = vpop.f32.mrf.mxu0  ;;  %v3677_v0 = vpop.f32.mrf.mxu1 }
 0x1b0   : > { %v3679_v53 = vadd.f32 %v886_v58, %v688_v42 }
 0x1b1   : > { %v888_v61 = vpop.f32.mrf.mxu0  ;;  %v3681_v31 = vpop.f32.mrf.mxu1 }
 0x1b2   : > { %v3683_v55 = vadd.f32 %v888_v61, %v690_v46 }
 0x1b3   : > { %v892_v62 = vpop.f32.mrf.mxu0  ;;  %v3685_v63 = vpop.f32.mrf.mxu1 }
 0x1b4   : > { %v3687_v57 = vadd.f32 %v892_v62, %v694_v50 }
 0x1b5   : > { %v894_v1 = vpop.f32.mrf.mxu0  ;;  %v3689_v2 = vpop.f32.mrf.mxu1 }
 0x1b6   : > { %v3691_v60 = vadd.f32 %v894_v1, %v696_v51 }
 0x1b7   : > { %v3693_v5 = vpop.f32.mrf.mxu1  ;;  %v3695_v6 = vpop.f32.mrf.mxu0 }
 0x1b9   : > { %v3697_v7 = vpop.f32.mrf.mxu1  ;;  %v3699_v8 = vpop.f32.mrf.mxu0 }
 0x1bb   : > { %v3701_v11 = vpop.f32.mrf.mxu1  ;;  %v3703_v44 = vpop.f32.mrf.mxu0 }
 0x1bd   : > { %v3705_v9 = vpop.f32.mrf.mxu1  ;;  %v3707_v13 = vpop.f32.mrf.mxu0 }
 0x1bf   : > { %v3709_v4 = vpop.f32.mrf.mxu1  ;;  %v3711_v19 = vpop.f32.mrf.mxu0 }
 0x1c1   : > { %v3713_v16 = vpop.f32.mrf.mxu1  ;;  %v3715_v17 = vpop.f32.mrf.mxu0 }
 0x1c3   : > { %v3717_v10 = vpop.f32.mrf.mxu1  ;;  %v3719_v18 = vpop.f32.mrf.mxu0 }
 0x1c5   : > { %v3721_v20 = vpop.f32.mrf.mxu1  ;;  %v3723_v22 = vpop.f32.mrf.mxu0 }
 0x1c7   : > { %v3725_v24 = vpop.f32.mrf.mxu0  ;;  %v3727_v27 = vpop.f32.mrf.mxu1 }
 0x1c9   : > { %v3729_v28 = vpop.f32.mrf.mxu0  ;;  %v3733_v34 = vpop.f32.mrf.mxu1 }
 0x1cb   : > { %v3731_v33 = vpop.f32.mrf.mxu0  ;;  %v3737_v36 = vpop.f32.mrf.mxu1 }
 0x1cd   : > { %v3735_v23 = vpop.f32.mrf.mxu0  ;;  %v3741_v38 = vpop.f32.mrf.mxu1 }
 0x1cf   : > { %v3739_v37 = vpop.f32.mrf.mxu0 }
 0x1d1   : > { %v3743_v40 = vpop.f32.mrf.mxu0 }
 0x1d3   : > { %v3745_v41 = vpop.f32.mrf.mxu0 }
 0x1d4   : > { %4036 = vst [vmem:[#allocation6_spill] sm:$0xff] %v3745_v41 }
 0x1d5   : > { %v1458_v29 = vpop.f32.mrf.mxu1  ;;  %v3749_v43 = vpop.f32.mrf.mxu0 }
 0x1d6   : > { %4037 = vst [vmem:[#allocation7_spill] sm:$0xff] %v3749_v43 }
 0x1d7   : > { %v1460_v21 = vpop.f32.mrf.mxu1 }
 0x1d9   : > { %v1464_v59 = vpop.f32.mrf.mxu1 }
 0x1db   : > { %v3747_v42 = vpop.f32.mrf.mxu1 }
 0x1dd   : > { %v3751_v45 = vpop.f32.mrf.mxu1 }
 0x1de   : > { %4038 = vst [vmem:[#allocation8_spill] sm:$0xff] %v3751_v45 }
 0x1df   : > { %v3753_v46 = vpop.f32.mrf.mxu1 }
 0x1e0   : > { %4039 = vst [vmem:[#allocation9_spill] sm:$0xff] %v3753_v46  ;;  %v1669_v48 = vpop.f32.mrf.mxu0 }
 0x1e1   : > { %v3755_v49 = vpop.f32.mrf.mxu1 }
 0x1e2   : > { %4040 = vst [vmem:[#allocation10_spill] sm:$0xff] %v3755_v49  ;;  %v1671_v50 = vpop.f32.mrf.mxu0 }
 0x1e3   : > { %v3757_v52 = vpop.f32.mrf.mxu1 }
 0x1e4   : > { %4041 = vst [vmem:[#allocation11_spill] sm:$0xff] %v3757_v52  ;;  %v3759_v54 = vpop.f32.mrf.mxu0 }
 0x1e5   : > { %v3763_v58 = vpop.f32.mrf.mxu1 }
 0x1e6   : > { %v3761_v51 = vpop.f32.mrf.mxu0  ;;  %4043 = vst [vmem:[#allocation13_spill] sm:$0xff] %v3763_v58 }
 0x1e7   : > { %4042 = vst [vmem:[#allocation12_spill] sm:$0xff] %v3761_v51  ;;  %v3769_v1 = vpop.f32.mrf.mxu1 }
 0x1e8   : > { %v3765_v61 = vpop.f32.mrf.mxu0  ;;  %4046 = vst [vmem:[#allocation16_spill] sm:$0xff] %v3769_v1 }
 0x1e9   : > { %4044 = vst [vmem:[#allocation14_spill] sm:$0xff] %v3765_v61  ;;  %v3775_v49 = vpop.f32.mrf.mxu1 }
 0x1ea   : > { %v3767_v62 = vpop.f32.mrf.mxu0  ;;  %4049 = vst [vmem:[#allocation19_spill] sm:$0xff] %v3775_v49 }
 0x1eb   : > { %4045 = vst [vmem:[#allocation15_spill] sm:$0xff] %v3767_v62  ;;  %v3779_v52 = vpop.f32.mrf.mxu1 }
 0x1ec   : > { %v3771_v45 = vpop.f32.mrf.mxu0 }
 0x1ed   : > { %4047 = vst [vmem:[#allocation17_spill] sm:$0xff] %v3771_v45  ;;  %v3783_v51 = vpop.f32.mrf.mxu1 }
 0x1ee   : > { %v3773_v46 = vpop.f32.mrf.mxu0  ;;  %4052 = vst [vmem:[#allocation22_spill] sm:$0xff] %v3783_v51  ;;  %v1109_v51 = vadd.f32 %v3681_v31, %v3655_v14  ;;  %v1114_v14 = vadd.f32 %v3701_v11, %v3665_v39 }
 0x1ef   : > { %4048 = vst [vmem:[#allocation18_spill] sm:$0xff] %v3773_v46  ;;  %v3787_v61 = vpop.f32.mrf.mxu1 }
 0x1f0   : > { %v3777_v43 = vpop.f32.mrf.mxu0  ;;  %4054 = vst [vmem:[#allocation24_spill] sm:$0xff] %v3787_v61  ;;  %v1110_v61 = vadd.f32 %v3685_v63, %v3657_v15 }
 0x1f1   : > { %4050 = vst [vmem:[#allocation20_spill] sm:$0xff] %v3777_v43  ;;  %v3791_v1 = vpop.f32.mrf.mxu1 }
 0x1f2   : > { %v3781_v41 = vpop.f32.mrf.mxu0  ;;  %v1272_v15 = vadd.f32 %v3703_v44, %v1110_v61  ;;  %v1119_v44 = vadd.f32 %v3721_v20, %v3675_v56  ;;  %v1122_v56 = vadd.f32 %v3737_v36, %v3687_v57  ;;  %v4059_v57 = vld [vmem:[#allocation6_spill] sm:$0xff] }
 0x1f3   : > { %4051 = vst [vmem:[#allocation21_spill] sm:$0xff] %v3781_v41  ;;  %v3795_v46 = vpop.f32.mrf.mxu1  ;;  %v1108_v41 = vadd.f32 %v3677_v0, %v3653_v12  ;;  %v1271_v12 = vadd.f32 %v3699_v8, %v1109_v51  ;;  %v1276_v8 = vadd.f32 %v3719_v18, %v1114_v14 }
 0x1f4   : > { %v3785_v58 = vpop.f32.mrf.mxu0  ;;  %4057 = vst [vmem:[#allocation27_spill] sm:$0xff] %v3795_v46  ;;  %v1112_v46 = vadd.f32 %v3693_v5, %v3661_v32  ;;  %v1116_v32 = vadd.f32 %v3709_v4, %v3669_v3  ;;  %v1117_v5 = vadd.f32 %v3713_v16, %v3671_v47  ;;  %v3852_v36 = vadd.f32 %v4059_v57, %v1122_v56 }
 0x1f5   : > { %4053 = vst [vmem:[#allocation23_spill] sm:$0xff] %v3785_v58 }
 0x1f6   : > { %v3789_v62 = vpop.f32.mrf.mxu0  ;;  %v1278_v47 = vadd.f32 %v3725_v24, %v1116_v32  ;;  %v1279_v18 = vadd.f32 %v3729_v28, %v1117_v5  ;;  %v4067_v32 = vld [vmem:[#allocation16_spill] sm:$0xff] }
 0x1f7   : > { %4055 = vst [vmem:[#allocation25_spill] sm:$0xff] %v3789_v62  ;;  %v1111_v62 = vadd.f32 %v3689_v2, %v3659_v25  ;;  %v1115_v25 = vadd.f32 %v3705_v9, %v3667_v26  ;;  %v1506_v26 = vadd.f32 %v1460_v21, %v1271_v12  ;;  %v1120_v9 = vadd.f32 %v3727_v27, %v3679_v53 }
 0x1f8   : > { %v3793_v45 = vpop.f32.mrf.mxu0  ;;  %v1123_v53 = vadd.f32 %v3741_v38, %v3691_v60  ;;  %v1281_v21 = vadd.f32 %v3735_v23, %v1119_v44  ;;  %v4060_v60 = vld [vmem:[#allocation12_spill] sm:$0xff]  ;;  %v1514_v5 = vadd.f32 %v4067_v32, %v1279_v18 }
 0x1f9   : > { %4056 = vst [vmem:[#allocation26_spill] sm:$0xff] %v3793_v45  ;;  %v1270_v45 = vadd.f32 %v3695_v6, %v1108_v41  ;;  %v1273_v63 = vadd.f32 %v3707_v13, %v1111_v62  ;;  %v1277_v3 = vadd.f32 %v3723_v22, %v1115_v25  ;;  %v1717_v16 = vadd.f32 %v1671_v50, %v1506_v26  ;;  %v4062_v23 = vld [vmem:[#allocation8_spill] sm:$0xff] }
 0x1fa   : > { %v3797_v49 = vpop.f32.mrf.mxu0  ;;  %v1282_v28 = vadd.f32 %v3739_v37, %v1120_v9  ;;  %v4063_v37 = vld [vmem:[#allocation9_spill] sm:$0xff] }
 0x1fb   : > { %4058 = vst [vmem:[#allocation28_spill] sm:$0xff] %v3797_v49  ;;  %v1113_v49 = vadd.f32 %v3697_v7, %v3663_v35  ;;  %v1505_v2 = vadd.f32 %v1458_v29, %v1270_v45  ;;  %v1274_v35 = vadd.f32 %v3711_v19, %v1112_v46  ;;  %v1118_v7 = vadd.f32 %v3717_v10, %v3673_v30  ;;  %v2157_v10 = vpop.permute.xlu0 %2156  ;;  %v2162_v46 = vpop.permute.xlu1 %2161 }
 0x1fc   : > { %v3815_v0 = vpop.f32.mrf.mxu0  ;;  %v1121_v30 = vadd.f32 %v3733_v34, %v3683_v55  ;;  %v1507_v19 = vadd.f32 %v1464_v59, %v1272_v15  ;;  %v1508_v27 = vadd.f32 %v3747_v42, %v1273_v63  ;;  %v4065_v15 = vld [vmem:[#allocation11_spill] sm:$0xff]  ;;  %v4066_v63 = vld [vmem:[#allocation13_spill] sm:$0xff] }
 0x1fd   : > { %v1275_v39 = vadd.f32 %v3715_v17, %v1113_v49  ;;  %v1716_v11 = vadd.f32 %v1669_v48, %v1505_v2  ;;  %v1280_v20 = vadd.f32 %v3731_v33, %v1118_v7  ;;  %v4061_v48 = vld [vmem:[#allocation7_spill] sm:$0xff]  ;;  %v1509_v50 = vadd.f32 %v4062_v23, %v1274_v35  ;;  %v4068_v7 = vld [vmem:[#allocation14_spill] sm:$0xff] }
 0x1fe   : > { %v3836_v13 = vpop.f32.mrf.mxu0  ;;  %v1718_v55 = vadd.f32 %v3759_v54, %v1507_v19  ;;  %v1283_v41 = vadd.f32 %v3743_v40, %v1121_v30  ;;  %v1719_v38 = vadd.f32 %v4060_v60, %v1508_v27  ;;  %v3858_v49 = vadd.f32 %v4061_v48, %v1123_v53  ;;  %v4064_v40 = vld [vmem:[#allocation10_spill] sm:$0xff]  ;;  %v4070_v30 = vld [vmem:[#allocation19_spill] sm:$0xff] }
 0x1ff   : > { %v1510_v54 = vadd.f32 %v4063_v37, %v1275_v39  ;;  %v1511_v51 = vadd.f32 %v4064_v40, %v1276_v8  ;;  %v1512_v25 = vadd.f32 %v4065_v15, %v1277_v3  ;;  %v1513_v2 = vadd.f32 %v4066_v63, %v1278_v47  ;;  %v2167_v27 = vpop.permute.xlu1 %2166  ;;  %v4074_v48 = vld [vmem:[#allocation18_spill] sm:$0xff] }
 0x200   : > { %v1720_v35 = vadd.f32 %v4068_v7, %v1509_v50  ;;  %v1515_v19 = vadd.f32 %v4070_v30, %v1280_v20  ;;  %v4077_v7 = vld [vmem:[#allocation23_spill] sm:$0xff] }
 0x205   : > { %v1872_v43 = vpop.f32.mrf.mxu1 }
 0x206   : > { %v1919_v17 = vadd.f32 %v1872_v43, %v1716_v11  ;;  %v4069_v11 = vld [vmem:[#allocation15_spill] sm:$0xff] }
 0x207   : > { %v1874_v58 = vpop.f32.mrf.mxu1  ;;  %v1721_v8 = vadd.f32 %v4069_v11, %v1510_v54 }
 0x208   : > { %v1920_v34 = vadd.f32 %v1874_v58, %v1717_v16  ;;  %v4071_v16 = vld [vmem:[#allocation17_spill] sm:$0xff] }
 0x209   : > { %v1878_v31 = vpop.f32.mrf.mxu1 }
 0x20a   : > { %v1921_v43 = vadd.f32 %v1878_v31, %v1718_v55  ;;  %v1516_v55 = vadd.f32 %v3779_v52, %v1281_v21  ;;  %v4075_v21 = vld [vmem:[#allocation20_spill] sm:$0xff] }
 0x20b   : > { %v1880_v6 = vpop.f32.mrf.mxu1 }
 0x20c   : > { %v1922_v62 = vadd.f32 %v1880_v6, %v1719_v38 }
 0x20d   : > { %v1884_v4 = vpop.f32.mrf.mxu1 }
 0x20f   : > { %v1886_v22 = vpop.f32.mrf.mxu1 }
 0x210   : > { %v2083_v24 = vpop.f32.mrf.mxu0  ;;  %v1924_v18 = vadd.f32 %v1886_v22, %v1721_v8  ;;  %v4073_v22 = vld [vmem:[#allocation24_spill] sm:$0xff] }
 0x211   : > { %v2130_v29 = vadd.f32 %v2083_v24, %v1919_v17  ;;  %v1890_v33 = vpop.f32.mrf.mxu1  ;;  %v1722_v17 = vadd.f32 %v4071_v16, %v1511_v51  ;;  %v4079_v16 = vld [vmem:[#allocation25_spill] sm:$0xff] }
 0x212   : > { %v2085_v59 = vpop.f32.mrf.mxu0 }
 0x213   : > { %v3855_v45 = vadd.f32 %v2157_v10, %v2130_v29  ;;  %v2131_v42 = vadd.f32 %v2085_v59, %v1920_v34  ;;  %v1892_v58 = vpop.f32.mrf.mxu1  ;;  %v4072_v34 = vld [vmem:[#allocation22_spill] sm:$0xff] }
 0x214   : > { %v2089_v61 = vpop.f32.mrf.mxu0  ;;  %v1517_v29 = vadd.f32 %v4072_v34, %v1282_v28  ;;  %v1724_v28 = vadd.f32 %v4075_v21, %v1513_v2  ;;  %v1519_v2 = vadd.f32 %v3791_v1, %v3852_v36 }
 0x215   : > { %v2210_v12 = vsub.f32 0.0, %v3855_v45  ;;  %v3864_v14 = vadd.f32 %v2157_v10, %v2131_v42  ;;  %v2132_v31 = vadd.f32 %v2089_v61, %v1921_v43  ;;  %v1896_v26 = vpop.f32.mrf.mxu1  ;;  %v1923_v10 = vadd.f32 %v1884_v4, %v1720_v35  ;;  %v4076_v61 = vld [vmem:[#allocation21_spill] sm:$0xff] }
 0x216   : > { %v2091_v39 = vpop.f32.mrf.mxu0  ;;  %v1925_v4 = vadd.f32 %v1890_v33, %v1722_v17  ;;  %v1518_v42 = vadd.f32 %v4073_v22, %v1283_v41  ;;  %v2172_v33 = vpop.permute.xlu0 %2171  ;;  %v1726_v35 = vadd.f32 %v4077_v7, %v1515_v19  ;;  %v1727_v17 = vadd.f32 %v4079_v16, %v1516_v55 }
 0x217   : > { %v2226_v44 = vmul.f32 1.442695, %v2210_v12  ;;  %v2211_v6 = vsub.f32 0.0, %v3864_v14  ;;  %v2133_v9 = vadd.f32 %v2091_v39, %v1922_v62  ;;  %v1898_v3 = vpop.f32.mrf.mxu1  ;;  %v3874_v56 = vadd.f32 %v2162_v46, %v2132_v31 }
 0x218   : > { %v2095_v47 = vpop.f32.mrf.mxu0  ;;  %v1725_v62 = vadd.f32 %v4076_v61, %v1514_v5 }
 0x219   : > { %2671 = vpow2.f32 %v2226_v44  ;;  %v2228_v53 = vmul.f32 1.442695, %v2211_v6  ;;  %v3876_v24 = vadd.f32 %v2162_v46, %v2133_v9  ;;  %v2212_v57 = vsub.f32 0.0, %v3874_v56  ;;  %v1902_v20 = vpop.f32.mrf.mxu1 }
 0x21a   : > { %v2134_v59 = vadd.f32 %v2095_v47, %v1923_v10  ;;  %v2097_v60 = vpop.f32.mrf.mxu0  ;;  %v1723_v46 = vadd.f32 %v4074_v48, %v1512_v25  ;;  %v1927_v25 = vadd.f32 %v1896_v26, %v1724_v28  ;;  %v1928_v8 = vadd.f32 %v1898_v3, %v1725_v62  ;;  %v4078_v26 = vld [vmem:[#allocation27_spill] sm:$0xff] }
 0x21b   : > { %2673 = vpow2.f32 %v2228_v53  ;;  %v2213_v38 = vsub.f32 0.0, %v3876_v24  ;;  %v2135_v43 = vadd.f32 %v2097_v60, %v1924_v18  ;;  %v2230_v23 = vmul.f32 1.442695, %v2212_v57  ;;  %v1904_v50 = vpop.f32.mrf.mxu1  ;;  %v2177_v18 = vpop.permute.xlu1 %2176  ;;  %v4080_v53 = vld [vmem:[#allocation26_spill] sm:$0xff] }
 0x21c   : > { %v3884_v37 = vadd.f32 %v2167_v27, %v2134_v59  ;;  %v2101_v52 = vpop.f32.mrf.mxu0  ;;  %v1926_v12 = vadd.f32 %v1892_v58, %v1723_v46  ;;  %v1520_v30 = vadd.f32 %v4078_v26, %v3858_v49  ;;  %v1929_v36 = vadd.f32 %v1902_v20, %v1726_v35 }
 0x21d   : > { %v2232_v54 = vmul.f32 1.442695, %v2213_v38  ;;  %v3887_v40 = vadd.f32 %v2167_v27, %v2135_v43  ;;  %v2136_v51 = vadd.f32 %v2101_v52, %v1925_v4  ;;  %2675 = vpow2.f32 %v2230_v23  ;;  %v1908_v31 = vpop.f32.mrf.mxu1  ;;  %v4081_v27 = vld [vmem:[#allocation28_spill] sm:$0xff] }
 0x21e   : > { %v2214_v41 = vsub.f32 0.0, %v3884_v37  ;;  %v2103_v15 = vpop.f32.mrf.mxu0  ;;  %v1728_v3 = vadd.f32 %v4080_v53, %v1517_v29  ;;  %v1729_v34 = vadd.f32 %v4081_v27, %v1518_v42  ;;  %v1930_v55 = vadd.f32 %v1904_v50, %v1727_v17  ;;  %v2182_v42 = vpop.permute.xlu0 %2181 }
 0x21f   : > { %2677 = vpow2.f32 %v2232_v54  ;;  %v2215_v63 = vsub.f32 0.0, %v3887_v40  ;;  %v3892_v32 = vadd.f32 %v2172_v33, %v2136_v51  ;;  %v1910_v11 = vpop.f32.mrf.mxu1  ;;  %v2137_v5 = vadd.f32 %v2103_v15, %v1926_v12 }
 0x220   : > { %v2234_v39 = vmul.f32 1.442695, %v2214_v41  ;;  %v2107_v58 = vpop.f32.mrf.mxu0  ;;  %v1730_v43 = vadd.f32 %v3815_v0, %v1519_v2  ;;  %v1731_v22 = vadd.f32 %v3836_v13, %v1520_v30  ;;  %v1931_v54 = vadd.f32 %v1908_v31, %v1728_v3 }
 0x221   : > { %v2236_v44 = vmul.f32 1.442695, %v2215_v63  ;;  %v2216_v6 = vsub.f32 0.0, %v3892_v32  ;;  %v2138_v9 = vadd.f32 %v2107_v58, %v1927_v25  ;;  %v3901_v10 = vadd.f32 %v2172_v33, %v2137_v5  ;;  %v1914_v59 = vpop.f32.mrf.mxu1 }
 0x222   : > { %2679 = vpow2.f32 %v2234_v39  ;;  %v2109_v1 = vpop.f32.mrf.mxu0  ;;  %v1932_v51 = vadd.f32 %v1910_v11, %v1729_v34  ;;  %v1933_v41 = vadd.f32 %v1914_v59, %v1730_v43  ;;  %v2187_v39 = vpop.permute.xlu1 %2186 }
 0x223   : > { %2681 = vpow2.f32 %v2236_v44  ;;  %v2238_v19 = vmul.f32 1.442695, %v2216_v6  ;;  %v2139_v47 = vadd.f32 %v2109_v1, %v1928_v8  ;;  %v2217_v57 = vsub.f32 0.0, %v3901_v10  ;;  %v1916_v33 = vpop.f32.mrf.mxu1  ;;  %v2192_v17 = vpop.permute.xlu0 %2191 }
 0x224   : > { %v3906_v60 = vadd.f32 %v2177_v18, %v2138_v9  ;;  %v2113_v49 = vpop.f32.mrf.mxu0  ;;  %v1934_v7 = vadd.f32 %v1916_v33, %v1731_v22 }
 0x225   : > { %2683 = vpow2.f32 %v2238_v19  ;;  %v3908_v4 = vadd.f32 %v2177_v18, %v2139_v47  ;;  %v2140_v38 = vadd.f32 %v2113_v49, %v1929_v36  ;;  %v2240_v48 = vmul.f32 1.442695, %v2217_v57 }
 0x226   : > { %v2672_v20 = vpop.eup %2671  ;;  %v2218_v29 = vsub.f32 0.0, %v3906_v60  ;;  %v2115_v46 = vpop.f32.mrf.mxu0 }
 0x227   : > { %v2258_v23 = vadd.f32 1.0, %v2672_v20  ;;  %v2219_v52 = vsub.f32 0.0, %v3908_v4  ;;  %v3914_v21 = vadd.f32 %v2182_v42, %v2140_v38  ;;  %v2141_v50 = vadd.f32 %v2115_v46, %v1930_v55 }
 0x228   : > { %v2674_v28 = vpop.eup %2673  ;;  %2685 = vpow2.f32 %v2240_v48  ;;  %v2242_v61 = vmul.f32 1.442695, %v2218_v29  ;;  %v2119_v0 = vpop.f32.mrf.mxu0 }
 0x229   : > { %2687 = vrcp.f32 %v2258_v23  ;;  %v2259_v13 = vadd.f32 1.0, %v2674_v28  ;;  %v2244_v62 = vmul.f32 1.442695, %v2219_v52  ;;  %v2220_v12 = vsub.f32 0.0, %v3914_v21 }
 0x22a   : > { %2689 = vpow2.f32 %v2242_v61  ;;  %v3917_v15 = vadd.f32 %v2182_v42, %v2141_v50  ;;  %v2142_v25 = vadd.f32 %v2119_v0, %v1931_v54  ;;  %v2121_v63 = vpop.f32.mrf.mxu0  ;;  %v2676_v2 = vpop.eup %2675 }
 0x22b   : > { %2691 = vrcp.f32 %v2259_v13  ;;  %v2246_v31 = vmul.f32 1.442695, %v2220_v12  ;;  %v2143_v35 = vadd.f32 %v2121_v63, %v1932_v51  ;;  %v2260_v5 = vadd.f32 1.0, %v2676_v2 }
 0x22c   : > { %v2678_v11 = vpop.eup %2677  ;;  %2693 = vpow2.f32 %v2244_v62  ;;  %v2221_v58 = vsub.f32 0.0, %v3917_v15  ;;  %v3920_v8 = vadd.f32 %v2187_v39, %v2142_v25  ;;  %v2125_v44 = vpop.f32.mrf.mxu0 }
 0x22d   : > { %v2261_v6 = vadd.f32 1.0, %v2678_v11  ;;  %2695 = vpow2.f32 %v2246_v31  ;;  %v3922_v9 = vadd.f32 %v2187_v39, %v2143_v35  ;;  %v2144_v26 = vadd.f32 %v2125_v44, %v1933_v41 }
 0x22e   : > { %2697 = vrcp.f32 %v2260_v5  ;;  %v2248_v30 = vmul.f32 1.442695, %v2221_v58  ;;  %v2222_v16 = vsub.f32 0.0, %v3920_v8  ;;  %v2127_v1 = vpop.f32.mrf.mxu0 }
 0x22f   : > { %v2680_v36 = vpop.eup %2679  ;;  %2699 = vrcp.f32 %v2261_v6  ;;  %v2223_v19 = vsub.f32 0.0, %v3922_v9  ;;  %v3926_v47 = vadd.f32 %v2192_v17, %v2144_v26  ;;  %v2145_v18 = vadd.f32 %v2127_v1, %v1934_v7 }
 0x230   : > { %v2682_v53 = vpop.eup %2681  ;;  %v2262_v3 = vadd.f32 1.0, %v2680_v36  ;;  %2701 = vpow2.f32 %v2248_v30  ;;  %v2250_v27 = vmul.f32 1.442695, %v2222_v16 }
 0x231   : > { %v2263_v34 = vadd.f32 1.0, %v2682_v53  ;;  %v2224_v57 = vsub.f32 0.0, %v3926_v47  ;;  %v3930_v59 = vadd.f32 %v2192_v17, %v2145_v18  ;;  %v2252_v55 = vmul.f32 1.442695, %v2223_v19 }
 0x232   : > { %v2684_v49 = vpop.eup %2683  ;;  %2703 = vrcp.f32 %v2262_v3 }
 0x233   : > { %2705 = vrcp.f32 %v2263_v34  ;;  %v2264_v38 = vadd.f32 1.0, %v2684_v49  ;;  %v2254_v20 = vmul.f32 1.442695, %v2224_v57  ;;  %v2225_v43 = vsub.f32 0.0, %v3930_v59 }
 0x234   : > { %2707 = vpow2.f32 %v2250_v27 }
 0x235   : > { %v2686_v22 = vpop.eup %2685  ;;  %2709 = vrcp.f32 %v2264_v38  ;;  %v2256_v48 = vmul.f32 1.442695, %v2225_v43 }
 0x236   : > { %v2688_v29 = vpop.eup %2687  ;;  %v2265_v42 = vadd.f32 1.0, %v2686_v22  ;;  %2711 = vpow2.f32 %v2252_v55 }
 0x237   : > { %v2690_v46 = vpop.eup %2689  ;;  %v2290_v23 = vmul.f32 %v2688_v29, %v3855_v45  ;;  %2713 = vpow2.f32 %v2254_v20 }
 0x238   : > { %v2692_v52 = vpop.eup %2691  ;;  %2715 = vrcp.f32 %v2265_v42  ;;  %v2266_v50 = vadd.f32 1.0, %v2690_v46 }
 0x239   : > { %v2694_v28 = vpop.eup %2693  ;;  %2306 = vst [vmem:[%s3936_s28] sm:$0xff] %v2290_v23  ;;  %v2291_v54 = vmul.f32 %v2692_v52, %v3864_v14  ;;  %2717 = vpow2.f32 %v2256_v48 }
 0x23a   : > { %v2696_v51 = vpop.eup %2695  ;;  %v2267_v33 = vadd.f32 1.0, %v2694_v28  ;;  %2719 = vrcp.f32 %v2266_v50 }
 0x23b   : > { %v2698_v61 = vpop.eup %2697  ;;  %2307 = vst [vmem:[%s3936_s28 + $0x8] sm:$0xff] %v2291_v54  ;;  %v2268_v45 = vadd.f32 1.0, %v2696_v51 }
 0x23c   : > { %v2700_v0 = vpop.eup %2699  ;;  %v2292_v13 = vmul.f32 %v2698_v61, %v3874_v56  ;;  %2721 = vrcp.f32 %v2267_v33 }
 0x23d   : > { %v2702_v62 = vpop.eup %2701  ;;  %v2293_v12 = vmul.f32 %v2700_v0, %v3876_v24  ;;  %2723 = vrcp.f32 %v2268_v45 }
 0x23e   : > { %2308 = vst [vmem:[%s3936_s28 + $0x10] sm:$0xff] %v2292_v13  ;;  %v2269_v14 = vadd.f32 1.0, %v2702_v62 }
 0x23f   : > { %v2704_v41 = vpop.eup %2703  ;;  %2309 = vst [vmem:[%s3936_s28 + $0x18] sm:$0xff] %v2293_v12 }
 0x240   : > { %v2706_v25 = vpop.eup %2705  ;;  %v2294_v63 = vmul.f32 %v2704_v41, %v3884_v37  ;;  %2725 = vrcp.f32 %v2269_v14 }
 0x241   : > { %v2708_v2 = vpop.eup %2707  ;;  %v2295_v7 = vmul.f32 %v2706_v25, %v3887_v40 }
 0x242   : > { %v2710_v31 = vpop.eup %2709  ;;  %2310 = vst [vmem:[%s3936_s28 + $0x20] sm:$0xff] %v2294_v63  ;;  %v2270_v56 = vadd.f32 1.0, %v2708_v2 }
 0x243   : > { %v2712_v35 = vpop.eup %2711  ;;  %2311 = vst [vmem:[%s3936_s28 + $0x28] sm:$0xff] %v2295_v7  ;;  %v2296_v24 = vmul.f32 %v2710_v31, %v3892_v32 }
 0x244   : > { %v2714_v39 = vpop.eup %2713  ;;  %v2271_v11 = vadd.f32 1.0, %v2712_v35  ;;  %2727 = vrcp.f32 %v2270_v56 }
 0x245   : > { %v2716_v5 = vpop.eup %2715  ;;  %2312 = vst [vmem:[%s3936_s28 + $0x30] sm:$0xff] %v2296_v24  ;;  %v2272_v37 = vadd.f32 1.0, %v2714_v39 }
 0x246   : > { %v2718_v58 = vpop.eup %2717  ;;  %v2297_v40 = vmul.f32 %v2716_v5, %v3901_v10  ;;  %2729 = vrcp.f32 %v2271_v11 }
 0x247   : > { %v2720_v44 = vpop.eup %2719  ;;  %2731 = vrcp.f32 %v2272_v37  ;;  %v2273_v6 = vadd.f32 1.0, %v2718_v58 }
 0x248   : > { %2313 = vst [vmem:[%s3936_s28 + $0x38] sm:$0xff] %v2297_v40  ;;  %v2298_v32 = vmul.f32 %v2720_v44, %v3906_v60 }
 0x249   : > { %v2722_v26 = vpop.eup %2721  ;;  %2733 = vrcp.f32 %v2273_v6 }
 0x24a   : > { %v2724_v30 = vpop.eup %2723  ;;  %v2299_v16 = vmul.f32 %v2722_v26, %v3908_v4  ;;  %2314 = vst [vmem:[%s3936_s28 + $0x40] sm:$0xff] %v2298_v32 }
 0x24b   : > { %v2300_v17 = vmul.f32 %v2724_v30, %v3914_v21 }
 0x24c   : > { %2315 = vst [vmem:[%s3936_s28 + $0x48] sm:$0xff] %v2299_v16 }
 0x24d   : > { %v2726_v10 = vpop.eup %2725  ;;  %2316 = vst [vmem:[%s3936_s28 + $0x50] sm:$0xff] %v2300_v17 }
 0x24e   : > { %v2301_v1 = vmul.f32 %v2726_v10, %v3917_v15 }
 0x250   : > { %2317 = vst [vmem:[%s3936_s28 + $0x58] sm:$0xff] %v2301_v1 }
 0x251   : > { %v2728_v60 = vpop.eup %2727 }
 0x252   : > { %v2302_v36 = vmul.f32 %v2728_v60, %v3920_v8 }
 0x253   : > { %v2730_v19 = vpop.eup %2729 }
 0x254   : > { %v2732_v4 = vpop.eup %2731  ;;  %v2303_v18 = vmul.f32 %v2730_v19, %v3922_v9  ;;  %2318 = vst [vmem:[%s3936_s28 + $0x60] sm:$0xff] %v2302_v36 }
 0x255   : > { %v2304_v21 = vmul.f32 %v2732_v4, %v3926_v47 }
 0x256   : > { %v2734_v53 = vpop.eup %2733  ;;  %2319 = vst [vmem:[%s3936_s28 + $0x68] sm:$0xff] %v2303_v18 }
 0x257   : > { %2320 = vst [vmem:[%s3936_s28 + $0x70] sm:$0xff] %v2304_v21  ;;  %v2305_v15 = vmul.f32 %v2734_v53, %v3930_v59 }
 0x259   : > { %2321 = vst [vmem:[%s3936_s28 + $0x78] sm:$0xff] %v2305_v15 }
 0x25a   : > { %2748 = shalt.err (!%p2745_p3)
}
 0x25b   : > { %s2749_s13 = scalar_lea.hbm %s3971_s7, 2048  ;;  %s2753_s22 = scalar_lea.hbm %s4025_s4, 4096 }
 0x25c   : > { %p2750_p4 = scmp.ne.s32.totalorder %s3971_s7, %s2749_s13  ;;  %p2754_p9 = scmp.lt.s32.totalorder %s3971_s7, %s4025_s4 }
 0x25d   : > { %p2755_p10 = scmp.lt.s32.totalorder %s2753_s22, %s2749_s13 }
 0x25e   : > { %p2751_p7 = pnand %p2750_p4, %p2872_p5 }
 0x25f   : > { %p2756_p11 = por %p2755_p10, %p2754_p9 }
 0x260   : > { %p2752_p8 = pneg %p2751_p7 }
 0x262   : > { %p2757_p12 = pnand %p2756_p11, %p2752_p8 }
 0x264   : > { %2760 = shalt.err (!%p2757_p12)
}
 0x265   : > { %s2808_s28 = smov 256  }
 0x266   : > { %2619 = dma.vmem_to_hbm [thread:$0]  (%p2872_p5), %s3975_s30, 2048, %s3971_s7, %s3980_s19, %s2808_s28, %s2808_s28, %s2798_s9  }
 0x267 PF: > { %p2625_p13 = scmp.ge.s32.totalorder %s2795_s18, 2  ;;  %s2351_s29 = sand.u32 1, %s2783_s15  }
 0x268   : > { %s2352_s5 = scalar_lea.sflag [#allocation4], %s2351_s29 }
 0x269   : > { %p2622_p0 = pnand %p2625_p13, %p2876_p6 }
 0x26b   : > { %p2623_p1 = pneg %p2622_p0 }
 0x26d   : > { %2778 = dma.done.wait (%p2623_p1), %s2352_s5, 2048  }
 0x26e   : > { %2780 = vsyncadd (%p2623_p1), %s2352_s5, 4294965248  ;;  %p14_p2 = scmp.ge.s32.totalorder %s2859_s21, 4   ;;  %s4082_s15 = smov %s2787_s16 }
 0x26f   : > { %s4083_s16 = smov %s2791_s17  ;;  %s4084_s17 = smov %s2870_s24 }
 0x270   : > { %s4085_s18 = smov %s2859_s21  ;;  %16 = sbr.rel (!%p14_p2) target bundleno = 3 (0x3), region = 82 }
 0x275   :  { %2357 = vsyncpa [#allocation4], 1 }
 0x276   :  { %2359 = vsyncpa [#allocation4 + $0x1], 1 }

</bundles_post_ra>
